<compile_context>
chip_gen: v7x
topology: tpu7x:2x2x1
jax: 0.10.0
libtpu: 0.0.40
codegen_flags: <defaults>
</compile_context>

<pallas_src>
import functools

import jax
import jax.numpy as jnp
from jax.experimental import pallas as pl
from jax.experimental.pallas import tpu as pltpu

LANES = 128                       # lane width / channel padding quantum
VMEM_LIMIT = 48 * 1024 * 1024     # safe on v5e/v6e (128 MiB) and v7x (64 MiB) VMEM


def _round_up(x, m):
    return (x + m - 1) // m * m


def _pick_row_tile(h, target=8):
    th = min(target, h)
    while h % th:
        th -= 1
    return th


# --------------------------------------------------------------------------------
# Kernel 1: (optional normalize+ReLU of input) -> zero-pad -> 3x3 conv + bias,
#           plus per-image batch statistics for the following BatchNorm.
# --------------------------------------------------------------------------------
def _conv_kernel(x_ref, w_ref, b_ref, ps_ref, pb_ref, y_ref, st_ref, pad_ref, *,
                 apply_act):
    # x_ref:   (1, H, W, Ci)   un-padded input image (resident across the row axis)
    # w_ref:   (9*Ci, Co)      3x3 taps flattened into K (tap index = dy*3 + dx)
    # b_ref:   (1, Co)         conv bias
    # ps_ref:  (1, Ci)         per-channel scale  for the input (block-2 fusion)
    # pb_ref:  (1, Ci)         per-channel shift  for the input (block-2 fusion)
    # y_ref:   (1, TH, W, Co)  raw conv output tile
    # st_ref:  (1, 2, Co)      per-image [sum, sum_of_squares]; resident accumulator
    # pad_ref: (H+2, W+2, Ci)  VMEM scratch: padded (and normalized) image
    _, H, W, Ci = x_ref.shape
    TH = y_ref.shape[1]
    Co = y_ref.shape[3]
    r = pl.program_id(1)

    # Build the zero-padded (and, for the fused second block, BN+ReLU'd) image once
    # per batch element; it stays resident in VMEM scratch for all row tiles.
    @pl.when(r == 0)
    def _():
        xin = x_ref[0].astype(jnp.float32)                       # (H, W, Ci)
        if apply_act:                                            # fused BN1 + ReLU
            xin = jnp.maximum(xin * ps_ref[0] + pb_ref[0], 0.0)
        pad_ref[...] = jnp.zeros_like(pad_ref)
        pad_ref[1:H + 1, 1:W + 1, :] = xin.astype(pad_ref.dtype)
        st_ref[...] = jnp.zeros_like(st_ref)

    # im2col for this row tile: one (TH*W, 9*Ci) @ (9*Ci, Co) MXU matmul.
    row0 = pl.multiple_of(r * TH, TH)
    win = pad_ref[pl.ds(row0, TH + 2), :, :]                     # (TH+2, W+2, Ci)
    taps = []
    for dy in range(3):
        for dx in range(3):
            taps.append(win[dy:dy + TH, dx:dx + W, :].reshape(TH * W, Ci))
    patch = jnp.concatenate(taps, axis=-1)                       # (TH*W, 9*Ci)

    acc = jnp.dot(patch, w_ref[...], preferred_element_type=jnp.float32)
    acc = acc + b_ref[0]                                         # (TH*W, Co), f32

    # Batch statistics accumulated in the resident output block (reduced over the
    # batch axis outside the kernel).
    s0 = jnp.sum(acc, axis=0, keepdims=True)                     # (1, Co)
    s1 = jnp.sum(acc * acc, axis=0, keepdims=True)               # (1, Co)
    st_ref[0, :, :] += jnp.concatenate([s0, s1], axis=0)         # (2, Co)

    y_ref[...] = acc.reshape(1, TH, W, Co).astype(y_ref.dtype)


def _conv_bn_stats(x_p, w_p, b_p, pre_scale, pre_shift, *, apply_act, TH,
                   compute_dtype, store_dtype):
    N, H, W, Ci = x_p.shape
    Co = w_p.shape[-1]
    R = H // TH
    kernel = functools.partial(_conv_kernel, apply_act=apply_act)
    return pl.pallas_call(
        kernel,
        out_shape=(jax.ShapeDtypeStruct((N, H, W, Co), store_dtype),
                   jax.ShapeDtypeStruct((N, 2, Co), jnp.float32)),
        grid=(N, R),
        in_specs=[
            pl.BlockSpec((1, H, W, Ci), lambda n, r: (n, 0, 0, 0)),  # resident per n
            pl.BlockSpec((9 * Ci, Co), lambda n, r: (0, 0)),         # weights resident
            pl.BlockSpec((1, Co), lambda n, r: (0, 0)),
            pl.BlockSpec((1, Ci), lambda n, r: (0, 0)),
            pl.BlockSpec((1, Ci), lambda n, r: (0, 0)),
        ],
        out_specs=(
            pl.BlockSpec((1, TH, W, Co), lambda n, r: (n, r, 0, 0)),
            pl.BlockSpec((1, 2, Co), lambda n, r: (n, 0, 0)),        # accumulator
        ),
        scratch_shapes=[pltpu.VMEM((H + 2, W + 2, Ci), compute_dtype)],
        compiler_params=pltpu.CompilerParams(
            dimension_semantics=("parallel", "arbitrary"),
            vmem_limit_bytes=VMEM_LIMIT),
    )(x_p, w_p, b_p, pre_scale, pre_shift)


# --------------------------------------------------------------------------------
# Kernel 2: final BatchNorm (precomputed scale/shift) + ReLU, pointwise, tiled.
# --------------------------------------------------------------------------------
def _norm_relu_kernel(y_ref, s_ref, t_ref, o_ref):
    y = y_ref[...].astype(jnp.float32)
    o_ref[...] = jnp.maximum(y * s_ref[0] + t_ref[0], 0.0).astype(o_ref.dtype)


def _norm_relu(y_raw, scale, shift, TH):
    N, H, W, Co = y_raw.shape
    R = H // TH
    return pl.pallas_call(
        _norm_relu_kernel,
        out_shape=jax.ShapeDtypeStruct((N, H, W, Co), jnp.float32),
        grid=(N, R),
        in_specs=[
            pl.BlockSpec((1, TH, W, Co), lambda n, r: (n, r, 0, 0)),
            pl.BlockSpec((1, Co), lambda n, r: (0, 0)),
            pl.BlockSpec((1, Co), lambda n, r: (0, 0)),
        ],
        out_specs=pl.BlockSpec((1, TH, W, Co), lambda n, r: (n, r, 0, 0)),
        compiler_params=pltpu.CompilerParams(
            dimension_semantics=("parallel", "parallel"),
            vmem_limit_bytes=VMEM_LIMIT),
    )(y_raw, scale, shift)


# --------------------------------------------------------------------------------
# JAX glue: reduce per-image stats -> per-channel (scale, shift); param packing.
# --------------------------------------------------------------------------------
def _finalize_stats(stats, gamma, beta, count, eps):
    ssum = jnp.sum(stats[:, 0, :], axis=0)              # (Co,)
    ssq = jnp.sum(stats[:, 1, :], axis=0)
    mean = ssum / count
    var = jnp.maximum(ssq / count - mean * mean, 0.0)    # biased (training-mode) var
    scale = gamma[0] * jax.lax.rsqrt(var + eps)
    shift = beta[0] - mean * scale
    return scale.reshape(1, -1), shift.reshape(1, -1)


def _pack_weight(w, ci_p, co_p):
    kh, kw, ci, co = w.shape
    wp = jnp.zeros((kh, kw, ci_p, co_p), jnp.float32)
    wp = wp.at[:, :, :ci, :co].set(w.astype(jnp.float32))
    return wp.reshape(kh * kw * ci_p, co_p)


def _pad_vec(v, cp):
    return jnp.pad(v.astype(jnp.float32), (0, cp - v.shape[0])).reshape(1, cp)


def double_conv(x_nchw, params, *, eps=1e-5, compute_dtype=jnp.bfloat16):
    """DoubleConv forward. Input/output are NCHW (PyTorch convention)."""
    x = jnp.transpose(x_nchw, (0, 2, 3, 1)).astype(jnp.float32)       # NCHW -> NHWC
    N, H, W, Cin = x.shape
    Cout = params["w1"].shape[-1]
    Ci = _round_up(Cin, LANES)
    Co = _round_up(Cout, LANES)
    TH = _pick_row_tile(H)

    xp = jnp.pad(x, ((0, 0), (0, 0), (0, 0), (0, Ci - Cin)))          # lane-pad channels

    w1 = _pack_weight(params["w1"], Ci, Co).astype(compute_dtype)
    w2 = _pack_weight(params["w2"], Co, Co).astype(compute_dtype)
    b1 = _pad_vec(params["b1"], Co)
    g1 = _pad_vec(params["g1"], Co)
    be1 = _pad_vec(params["be1"], Co)
    b2 = _pad_vec(params["b2"], Co)
    g2 = _pad_vec(params["g2"], Co)
    be2 = _pad_vec(params["be2"], Co)

    ident_s = jnp.ones((1, Ci), jnp.float32)
    ident_t = jnp.zeros((1, Ci), jnp.float32)

    # block 1: conv1 (+bias) and batch statistics.
    y1, st1 = _conv_bn_stats(xp, w1, b1, ident_s, ident_t, apply_act=False,
                             TH=TH, compute_dtype=compute_dtype,
                             store_dtype=compute_dtype)
    s1, t1 = _finalize_stats(st1, g1, be1, N * H * W, eps)

    # block 2: BN1+ReLU fused into conv2's input path, conv2 (+bias), statistics.
    y2, st2 = _conv_bn_stats(y1, w2, b2, s1, t1, apply_act=True,
                             TH=TH, compute_dtype=compute_dtype,
                             store_dtype=jnp.float32)
    s2, t2 = _finalize_stats(st2, g2, be2, N * H * W, eps)

    # final BN2 + ReLU.
    out = _norm_relu(y2, s2, t2, TH)                                   # (N, H, W, Co)
    return jnp.transpose(out[..., :Cout], (0, 3, 1, 2))                # NHWC -> NCHW


# --------------------------------------------------------------------------------
# Params + pure-JAX reference for validation.
# --------------------------------------------------------------------------------
def init_params(key, inchannel, outchannel):
    k1, k2, k3, k4 = jax.random.split(key, 4)
    scale1 = 1.0 / jnp.sqrt(inchannel * 9.0)
    scale2 = 1.0 / jnp.sqrt(outchannel * 9.0)
    return {
        # conv weights stored as (kh, kw, Cin, Cout)
        "w1": jax.random.uniform(k1, (3, 3, inchannel, outchannel), jnp.float32,
                                 -scale1, scale1),
        "b1": jax.random.uniform(k2, (outchannel,), jnp.float32, -scale1, scale1),
        "g1": jnp.ones((outchannel,), jnp.float32),
        "be1": jnp.zeros((outchannel,), jnp.float32),
        "w2": jax.random.uniform(k3, (3, 3, outchannel, outchannel), jnp.float32,
                                 -scale2, scale2),
        "b2": jax.random.uniform(k4, (outchannel,), jnp.float32, -scale2, scale2),
        "g2": jnp.ones((outchannel,), jnp.float32),
        "be2": jnp.zeros((outchannel,), jnp.float32),
    }


def _ref_block(x_nchw, w, b, gamma, beta, eps=1e-5):
    y = jax.lax.conv_general_dilated(
        x_nchw, jnp.transpose(w, (3, 2, 0, 1)),
        window_strides=(1, 1), padding=((1, 1), (1, 1)),
        dimension_numbers=("NCHW", "OIHW", "NCHW"))
    y = y + b[None, :, None, None]
    mean = jnp.mean(y, axis=(0, 2, 3), keepdims=True)
    var = jnp.mean((y - mean) ** 2, axis=(0, 2, 3), keepdims=True)
    y = (y - mean) * jax.lax.rsqrt(var + eps) * gamma[None, :, None, None] \
        + beta[None, :, None, None]
    return jnp.maximum(y, 0.0)


def _ref_double_conv(x_nchw, p):
    y = _ref_block(x_nchw, p["w1"], p["b1"], p["g1"], p["be1"])
    return _ref_block(y, p["w2"], p["b2"], p["g2"], p["be2"])


if __name__ == "__main__":
    key = jax.random.PRNGKey(0)
    kx, kp = jax.random.split(key)

    batch, inchannel, outchannel, spatial = 2, 4, 8, 16
    x = jax.random.normal(kx, (batch, inchannel, spatial, spatial), jnp.float32)
    params = init_params(kp, inchannel, outchannel)

    ref = jax.block_until_ready(_ref_double_conv(x, params))

    # f32 matmul path: tight check vs the f32 JAX reference.
    out_f32 = jax.block_until_ready(double_conv(x, params, compute_dtype=jnp.float32))
    assert out_f32.shape == (batch, outchannel, spatial, spatial)
    assert jnp.max(jnp.abs(out_f32 - ref)) < 1e-3, "f32 path mismatch vs reference"

    # bf16 matmul path (v6e/v7x MXU feed, f32 accumulation): looser tolerance.
    out_bf16 = jax.block_until_ready(double_conv(x, params, compute_dtype=jnp.bfloat16))
    assert jnp.max(jnp.abs(out_bf16 - ref)) < 1e-1, "bf16 path mismatch vs reference"

    # TODO(synk): BatchNorm running_mean/var buffer updates (training-time side
    # effect only) are not modeled; they do not affect the forward output.
    print("KERNEL_OK")
</pallas_src>

<mosaic_0001>
module attributes {stable_mosaic.version = 11 : i64} {
  func.func @_conv_kernel(%arg0: i32, %arg1: i32, %arg2: memref<1x16x16x128xf32, #tpu.memory_space<vmem>>, %arg3: memref<1152x128xf32, #tpu.memory_space<vmem>>, %arg4: memref<1x128xf32, #tpu.memory_space<vmem>>, %arg5: memref<1x128xf32, #tpu.memory_space<vmem>>, %arg6: memref<1x128xf32, #tpu.memory_space<vmem>>, %arg7: memref<1x8x16x128xf32, #tpu.memory_space<vmem>>, %arg8: memref<1x2x128xf32, #tpu.memory_space<vmem>>, %arg9: memref<18x18x128xf32, #tpu.memory_space<vmem>>) attributes {dimension_semantics = [#tpu.dimension_semantics<parallel>, #tpu.dimension_semantics<arbitrary>], iteration_bounds = array<i64: 2, 2>, scalar_prefetch = 0 : i64, scratch_operands = 1 : i64, tpu.core_type = #tpu.core_type<tc>, window_params = [{transform_indices = @transform_0, window_bounds = array<i64: 1, 16, 16, 128>}, {pipeline_mode = #tpu.pipeline_mode<synchronous>, transform_indices = @transform_1, window_bounds = array<i64: 1152, 128>}, {pipeline_mode = #tpu.pipeline_mode<synchronous>, transform_indices = @transform_2, window_bounds = array<i64: 1, 128>}, {pipeline_mode = #tpu.pipeline_mode<synchronous>, transform_indices = @transform_3, window_bounds = array<i64: 1, 128>}, {pipeline_mode = #tpu.pipeline_mode<synchronous>, transform_indices = @transform_4, window_bounds = array<i64: 1, 128>}, {transform_indices = @transform_5, window_bounds = array<i64: 1, 8, 16, 128>}, {transform_indices = @transform_6, window_bounds = array<i64: 1, 2, 128>}]} {
    %c0_i32 = arith.constant 0 : i32
    %0 = arith.cmpi eq, %arg1, %c0_i32 : i32
    %1 = arith.extui %0 : i1 to i32
    %c0_i32_0 = arith.constant 0 : i32
    %2 = arith.cmpi ne, %1, %c0_i32_0 : i32
    scf.if %2 {
      %c0_18 = arith.constant 0 : index
      %c0_19 = arith.constant 0 : index
      %c0_20 = arith.constant 0 : index
      %c0_21 = arith.constant 0 : index
      %47 = vector.load %arg2[%c0_18, %c0_19, %c0_20, %c0_21] : memref<1x16x16x128xf32, #tpu.memory_space<vmem>>, vector<1x16x16x128xf32>
      %48 = vector.shape_cast %47 : vector<1x16x16x128xf32> to vector<16x16x128xf32>
      %cst_22 = arith.constant 0.000000e+00 : f32
      %49 = vector.broadcast %cst_22 : f32 to vector<18x18x128xf32>
      %c0_23 = arith.constant 0 : index
      %c0_24 = arith.constant 0 : index
      %c0_25 = arith.constant 0 : index
      %50 = vector.load %arg9[%c0_23, %c0_24, %c0_25] : memref<18x18x128xf32, #tpu.memory_space<vmem>>, vector<18x18x128xf32>
      tpu.vector_store %arg9[%c0_23, %c0_24, %c0_25], %49 {strides = array<i32>} : memref<18x18x128xf32, #tpu.memory_space<vmem>>, vector<18x18x128xf32>,
      %c1 = arith.constant 1 : index
      %c1_26 = arith.constant 1 : index
      %c0_27 = arith.constant 0 : index
      %51 = vector.load %arg9[%c1, %c1_26, %c0_27] : memref<18x18x128xf32, #tpu.memory_space<vmem>>, vector<16x16x128xf32>
      tpu.vector_store %arg9[%c1, %c1_26, %c0_27], %48 {strides = array<i32>} : memref<18x18x128xf32, #tpu.memory_space<vmem>>, vector<16x16x128xf32>,
      %cst_28 = arith.constant 0.000000e+00 : f32
      %52 = vector.broadcast %cst_28 : f32 to vector<1x2x128xf32>
      %c0_29 = arith.constant 0 : index
      %c0_30 = arith.constant 0 : index
      %c0_31 = arith.constant 0 : index
      %53 = vector.load %arg8[%c0_29, %c0_30, %c0_31] : memref<1x2x128xf32, #tpu.memory_space<vmem>>, vector<1x2x128xf32>
      tpu.vector_store %arg8[%c0_29, %c0_30, %c0_31], %52 {strides = array<i32>} : memref<1x2x128xf32, #tpu.memory_space<vmem>>, vector<1x2x128xf32>,
    } else {
    }
    %c8_i32 = arith.constant 8 : i32
    %3 = arith.muli %arg1, %c8_i32 : i32
    %4 = tpu.assume_multiple %3, 8 : i32
    %5 = arith.index_cast %4 : i32 to index
    %c0 = arith.constant 0 : index
    %c0_1 = arith.constant 0 : index
    %6 = vector.load %arg9[%5, %c0, %c0_1] : memref<18x18x128xf32, #tpu.memory_space<vmem>>, vector<10x18x128xf32>
    %7 = vector.extract_strided_slice %6 {offsets = [0, 0, 0], sizes = [8, 16, 128], strides = [1, 1, 1]} : vector<10x18x128xf32> to vector<8x16x128xf32>
    %8 = vector.shape_cast %7 : vector<8x16x128xf32> to vector<128x128xf32>
    %9 = vector.extract_strided_slice %6 {offsets = [0, 1, 0], sizes = [8, 16, 128], strides = [1, 1, 1]} : vector<10x18x128xf32> to vector<8x16x128xf32>
    %10 = vector.shape_cast %9 : vector<8x16x128xf32> to vector<128x128xf32>
    %11 = vector.extract_strided_slice %6 {offsets = [0, 2, 0], sizes = [8, 16, 128], strides = [1, 1, 1]} : vector<10x18x128xf32> to vector<8x16x128xf32>
    %12 = vector.shape_cast %11 : vector<8x16x128xf32> to vector<128x128xf32>
    %13 = vector.extract_strided_slice %6 {offsets = [1, 0, 0], sizes = [8, 16, 128], strides = [1, 1, 1]} : vector<10x18x128xf32> to vector<8x16x128xf32>
    %14 = vector.shape_cast %13 : vector<8x16x128xf32> to vector<128x128xf32>
    %15 = vector.extract_strided_slice %6 {offsets = [1, 1, 0], sizes = [8, 16, 128], strides = [1, 1, 1]} : vector<10x18x128xf32> to vector<8x16x128xf32>
    %16 = vector.shape_cast %15 : vector<8x16x128xf32> to vector<128x128xf32>
    %17 = vector.extract_strided_slice %6 {offsets = [1, 2, 0], sizes = [8, 16, 128], strides = [1, 1, 1]} : vector<10x18x128xf32> to vector<8x16x128xf32>
    %18 = vector.shape_cast %17 : vector<8x16x128xf32> to vector<128x128xf32>
    %19 = vector.extract_strided_slice %6 {offsets = [2, 0, 0], sizes = [8, 16, 128], strides = [1, 1, 1]} : vector<10x18x128xf32> to vector<8x16x128xf32>
    %20 = vector.shape_cast %19 : vector<8x16x128xf32> to vector<128x128xf32>
    %21 = vector.extract_strided_slice %6 {offsets = [2, 1, 0], sizes = [8, 16, 128], strides = [1, 1, 1]} : vector<10x18x128xf32> to vector<8x16x128xf32>
    %22 = vector.shape_cast %21 : vector<8x16x128xf32> to vector<128x128xf32>
    %23 = vector.extract_strided_slice %6 {offsets = [2, 2, 0], sizes = [8, 16, 128], strides = [1, 1, 1]} : vector<10x18x128xf32> to vector<8x16x128xf32>
    %24 = vector.shape_cast %23 : vector<8x16x128xf32> to vector<128x128xf32>
    %25 = tpu.concatenate %8, %10, %12, %14, %16, %18, %20, %22, %24 in 1 : vector<128x128xf32>, vector<128x128xf32>, vector<128x128xf32>, vector<128x128xf32>, vector<128x128xf32>, vector<128x128xf32>, vector<128x128xf32>, vector<128x128xf32>, vector<128x128xf32> -> vector<128x1152xf32>
    %c0_2 = arith.constant 0 : index
    %c0_3 = arith.constant 0 : index
    %26 = vector.load %arg3[%c0_2, %c0_3] : memref<1152x128xf32, #tpu.memory_space<vmem>>, vector<1152x128xf32>
    %cst = arith.constant dense<0.000000e+00> : vector<128x128xf32>
    %27 = tpu.matmul %25, %26, %cst {dimension_numbers = #tpu.dot_dimension_numbers<[1], [0], [0], [1], [0, 0, 1, 1], [], []>} : vector<128x1152xf32>, vector<1152x128xf32>, vector<128x128xf32> -> vector<128x128xf32>
    %c0_4 = arith.constant 0 : index
    %c0_5 = arith.constant 0 : index
    %28 = vector.load %arg4[%c0_4, %c0_5] : memref<1x128xf32, #tpu.memory_space<vmem>>, vector<1x128xf32>
    %29 = vector.shape_cast %28 : vector<1x128xf32> to vector<128xf32>
    %30 = vector.shape_cast %29 : vector<128xf32> to vector<1x128xf32>
    %31 = vector.broadcast %30 : vector<1x128xf32> to vector<128x128xf32>
    %32 = arith.addf %27, %31 : vector<128x128xf32>
    %cst_6 = arith.constant dense<0.000000e+00> : vector<128xf32>
    %33 = vector.multi_reduction <add>, %32, %cst_6 [0] : vector<128x128xf32> to vector<128xf32>
    %34 = vector.shape_cast %33 : vector<128xf32> to vector<1x128xf32>
    %35 = arith.mulf %32, %32 : vector<128x128xf32>
    %cst_7 = arith.constant dense<0.000000e+00> : vector<128xf32>
    %36 = vector.multi_reduction <add>, %35, %cst_7 [0] : vector<128x128xf32> to vector<128xf32>
    %37 = vector.shape_cast %36 : vector<128xf32> to vector<1x128xf32>
    %c0_8 = arith.constant 0 : index
    %c0_9 = arith.constant 0 : index
    %c0_10 = arith.constant 0 : index
    %38 = vector.load %arg8[%c0_8, %c0_9, %c0_10] : memref<1x2x128xf32, #tpu.memory_space<vmem>>, vector<1x2x128xf32>
    %39 = vector.shape_cast %38 : vector<1x2x128xf32> to vector<2x128xf32>
    %40 = tpu.concatenate %34, %37 in 0 : vector<1x128xf32>, vector<1x128xf32> -> vector<2x128xf32>
    %41 = arith.addf %39, %40 : vector<2x128xf32>
    %c0_11 = arith.constant 0 : index
    %c0_12 = arith.constant 0 : index
    %c0_13 = arith.constant 0 : index
    %42 = vector.load %arg8[%c0_11, %c0_12, %c0_13] : memref<1x2x128xf32, #tpu.memory_space<vmem>>, vector<1x2x128xf32>
    %43 = vector.shape_cast %42 : vector<1x2x128xf32> to vector<2x128xf32>
    %44 = vector.shape_cast %41 : vector<2x128xf32> to vector<1x2x128xf32>
    tpu.vector_store %arg8[%c0_11, %c0_12, %c0_13], %44 {strides = array<i32>} : memref<1x2x128xf32, #tpu.memory_space<vmem>>, vector<1x2x128xf32>,
    %45 = vector.shape_cast %32 : vector<128x128xf32> to vector<1x8x16x128xf32>
    %c0_14 = arith.constant 0 : index
    %c0_15 = arith.constant 0 : index
    %c0_16 = arith.constant 0 : index
    %c0_17 = arith.constant 0 : index
    %46 = vector.load %arg7[%c0_14, %c0_15, %c0_16, %c0_17] : memref<1x8x16x128xf32, #tpu.memory_space<vmem>>, vector<1x8x16x128xf32>
    tpu.vector_store %arg7[%c0_14, %c0_15, %c0_16, %c0_17], %45 {strides = array<i32>} : memref<1x8x16x128xf32, #tpu.memory_space<vmem>>, vector<1x8x16x128xf32>,
    return
  }
  func.func @transform_0(%arg0: i32, %arg1: i32) -> (i32, i32, i32, i32) {
    %c0_i32 = arith.constant 0 : i32
    %c0_i32_0 = arith.constant 0 : i32
    %c0_i32_1 = arith.constant 0 : i32
    %c0_i32_2 = arith.constant 0 : i32
    return %arg0, %c0_i32, %c0_i32_0, %c0_i32_1 : i32, i32, i32, i32
  }
  func.func @transform_1(%arg0: i32, %arg1: i32) -> (i32, i32) {
    %c0_i32 = arith.constant 0 : i32
    %c0_i32_0 = arith.constant 0 : i32
    %c0_i32_1 = arith.constant 0 : i32
    return %c0_i32, %c0_i32_0 : i32, i32
  }
  func.func @transform_2(%arg0: i32, %arg1: i32) -> (i32, i32) {
    %c0_i32 = arith.constant 0 : i32
    %c0_i32_0 = arith.constant 0 : i32
    %c0_i32_1 = arith.constant 0 : i32
    return %c0_i32, %c0_i32_0 : i32, i32
  }
  func.func @transform_3(%arg0: i32, %arg1: i32) -> (i32, i32) {
    %c0_i32 = arith.constant 0 : i32
    %c0_i32_0 = arith.constant 0 : i32
    %c0_i32_1 = arith.constant 0 : i32
    return %c0_i32, %c0_i32_0 : i32, i32
  }
  func.func @transform_4(%arg0: i32, %arg1: i32) -> (i32, i32) {
    %c0_i32 = arith.constant 0 : i32
    %c0_i32_0 = arith.constant 0 : i32
    %c0_i32_1 = arith.constant 0 : i32
    return %c0_i32, %c0_i32_0 : i32, i32
  }
  func.func @transform_5(%arg0: i32, %arg1: i32) -> (i32, i32, i32, i32) {
    %c0_i32 = arith.constant 0 : i32
    %c0_i32_0 = arith.constant 0 : i32
    %c0_i32_1 = arith.constant 0 : i32
    return %arg0, %arg1, %c0_i32, %c0_i32_0 : i32, i32, i32, i32
  }
  func.func @transform_6(%arg0: i32, %arg1: i32) -> (i32, i32, i32) {
    %c0_i32 = arith.constant 0 : i32
    %c0_i32_0 = arith.constant 0 : i32
    %c0_i32_1 = arith.constant 0 : i32
    return %arg0, %c0_i32, %c0_i32_0 : i32, i32, i32
  }
}

</mosaic_0001>

<bundles_post_ra>
// kernel: tpu_custom_call.1
= control target key start
LH: loop header
LB: loop body
LE: loop exit
PB: predicated region body
PF: predicated region fallthrough
CT: control target
= control target key end

     0   :  { %s3721_s0 = inlined_call_operand.hbm [shape: f32[2,16,16,128], index: 0, kind: input, shape index: {}]   ;;  %s3722_s1 = inlined_call_operand.hbm [shape: f32[1152,128], index: 1, kind: input, shape index: {}]   ;;  %s3723_s2 = inlined_call_operand.vmem [shape: f32[1,128], index: 2, kind: input, shape index: {}]   ;;  %s3724_s3 = inlined_call_operand.vmem [shape: f32[1,128], index: 3, kind: input, shape index: {}]   ;;  %s3725_s4 = inlined_call_operand.vmem [shape: f32[1,128], index: 4, kind: input, shape index: {}]   ;;  %s3726_s5 = inlined_call_operand.hbm [shape: f32[2,16,16,128], index: 5, kind: output, shape index: {0}]   ;;  %s3727_s6 = inlined_call_operand.hbm [shape: f32[2,2,128], index: 6, kind: output, shape index: {1}]  }
   0x1   :  { %3746 = sst [smem:[#allocation23_spill]] %s3722_s1 }
   0x2   :  { %3747 = sst [smem:[#allocation24_spill]] %s3727_s6 }
   0x3   :  { %12 = vsyncpa [#allocation4], 0 }
   0x4   :  { %14 = vsyncpa [#allocation4 + $0x1], 0 }
   0x5   :  { %15 = vsyncpa [#allocation7], 0 }
   0x6   :  { %16 = vsyncpa [#allocation5], 0 }
   0x7   :  { %18 = vsyncpa [#allocation5 + $0x1], 0 }
   0x8   :  { %19 = vsyncpa [#allocation10], 0 }
   0x9   :  { %21 = vsyncpa [#allocation10 + $0x1], 0  ;;  %s2758_s21 = smov 0   ;;  %s2760_s22 = smov 0  }
   0xa   :  { %s2762_s3 = smov 0   ;;  %s2764_s4 = smov 0  }
   0xb   :  { %s2766_s23 = smov 0   ;;  %s2768_s24 = smov 0  }
   0xc   :  { %s2770_s25 = smov 0   ;;  %s2772_s26 = smov 0  }
   0xd   :  { %s2774_s27 = smov 0   ;;  %s2776_s28 = smov 0  }
   0xe   :  { %s2778_s29 = smov 0  }
   0xf LB: > { %3748 = sst [smem:[#allocation15_spill]] %s2672_s21  ;;  %s1761_s30 = sadd.s32 4294967295, %s2712_s29   ;;  %s2712_s29 = sphi %s2778_s29, %s27_s29   ;;  %s2708_s28 = sphi %s2776_s28, %s3795_s28   ;;  %s2704_s27 = sphi %s2774_s27, %s3794_s27   ;;  %s2700_s26 = sphi %s2772_s26, %s3793_s26   ;;  %s2696_s25 = sphi %s2770_s25, %s3784_s25   ;;  %s2692_s24 = sphi %s2768_s24, %s3792_s24   ;;  %s2688_s23 = sphi %s2766_s23, %s3791_s23   ;;  %s2684_s4 = sphi %s2764_s4, %s3790_s4   ;;  %s2680_s3 = sphi %s2762_s3, %s3789_s3   ;;  %s2676_s22 = sphi %s2760_s22, %s3788_s22   ;;  %s2672_s21 = sphi %s2758_s21, %s3787_s21  }
  0x10   : > { %3749 = sst [smem:[#allocation16_spill]] %s2684_s4  ;;  %s1762_s7 = sadd.s32 4294967294, %s2712_s29  }
  0x11   : > { %3750 = sst [smem:[#allocation17_spill]] %s2704_s27  ;;  %p59_p0 = scmp.ne.s32.totalorder %s2688_s23, %s2684_s4 }
  0x12   : > { %p2817_p1 = scmp.eq.s32.totalorder %s1761_s30, 0  ;;  %p168_p2 = scmp.ne.s32.totalorder %s2680_s3, %s2676_s22 }
  0x13   : > { %p2830_p4 = scmp.eq.s32.totalorder %s1761_s30, 3  ;;  %p174_p5 = scmp.ne.s32.totalorder %s2676_s22, %s2672_s21 }
  0x14   : > { %s3751_s8 = scalar_select %p2817_p1, 1, 0 }
  0x15   : > { %p2826_p3 = por %p2817_p1, %p59_p0  ;;  %p175_p6 = scmp.eq.s32.totalorder %s1762_s7, 3 }
  0x16   : > { %s3753_s11 = scalar_select %p2830_p4, 1, 0 }
  0x17   : > { %s3752_s10 = scalar_select %p2826_p3, 1, 0 }
  0x18   : > { %p2838_p7 = por %p2830_p4, %p168_p2  ;;  %p1763_p8 = scmp.ge.s32.totalorder %s2712_s29, 1 }
  0x19   : > { %p2843_p9 = por %p175_p6, %p174_p5  ;;  %p2847_p10 = por %p175_p6, %p59_p0 }
  0x1a   : > { %s3754_s12 = scalar_select %p2838_p7, 1, 0 }
  0x1b   : > { %s3755_s13 = scalar_select %p2843_p9, 1, 0 }
  0x1c   : > { %s3757_s14 = scalar_select %p2847_p10, 1, 0 }
  0x1d   : > { %3756 = sst [smem:[#allocation18_spill]] %s3755_s13  ;;  %p208_p11 = scmp.lt.s32.totalorder %s2712_s29, 5 }
  0x1e   : > { %3758 = sst [smem:[#allocation19_spill]] %s3757_s14  ;;  %s2714_s16 = smov [#allocation6]  }
  0x1f   : > { %p2852_p12 = pnand %p1763_p8, %p208_p11  ;;  %s220_s17 = sshll.u32 %s2714_s16, 4  ;;  %s221_s17 = int_to_ptr.vmem [resolvable:$true] %s220_s17 }
  0x20   : > { %s3761_s1 = sld [smem:[#allocation23_spill]] }
  0x21   : > { %s3759_s15 = scalar_select %p2852_p12, 1, 0 }
  0x22   : > { %p2383_p13 = pneg %p2852_p12 }
  0x24   : > { %p2860_p2 = pnand %p2383_p13, %p2817_p1 }
  0x26   : > { %s2496_s30 = scalar_lea.hbm %s3761_s1, 18432  ;;  %p2498_p5 = pneg %p2860_p2 }
  0x27   : > { %p2497_p0 = scmp.ne.s32.totalorder %s3761_s1, %s2496_s30  ;;  %p2503_p11 = scmp.lt.u32.totalorder %s2496_s30, %s3761_s1 }
  0x29   : > { %p2499_p6 = pnand %p2498_p5, %p2497_p0 }
  0x2b   : > { %p2500_p8 = pneg %p2499_p6 }
  0x2d   : > { %p2505_p13 = pnand %p2503_p11, %p2500_p8 }
  0x2f   : > { %2508 = shalt.err (!%p2505_p13)
}
  0x30   : > { %s2509_s4 = scalar_lea.vmem %s221_s17, 18432  ;;  %p2517_p1 = scmp.lt.s32.totalorder %s221_s17, %s221_s17 }
  0x31   : > { %p2510_p10 = scmp.ne.s32.totalorder %s221_s17, %s2509_s4  ;;  %p2518_p3 = scmp.lt.s32.totalorder %s2509_s4, %s2509_s4 }
  0x33   : > { %p2512_p9 = pnand %p2510_p10, %p2498_p5  ;;  %p2519_p12 = por %p2518_p3, %p2517_p1 }
  0x35   : > { %p2513_p7 = pneg %p2512_p9 }
  0x37   : > { %p2520_p4 = pnand %p2519_p12, %p2513_p7 }
  0x39   : > { %2523 = shalt.err (!%p2520_p4)
}
  0x3a   : > { %s3736_s9 = smov 128   ;;  %s3737_s14 = smov 8  }
  0x3b   : > { %2386 = dma.hbm_to_vmem [thread:$0]  (!%p2860_p2), %s3761_s1, 18432, %s221_s17, [#allocation7], %s3736_s9, %s3736_s9, %s3737_s14  }
  0x3c   : > { %s36_s20 = sadd.s32 1, %s2704_s27  ;;  %s39_s30 = sadd.s32 1, %s2708_s28 }
  0x3d   : > { %p37_p1 = scmp.ge.s32.totalorder %s36_s20, 2  ;;  %s46_s7 = sadd.s32 1, %s2692_s24 }
  0x3e   : > { %p53_p3 = scmp.ne.s32.totalorder %s2692_s24, %s2688_s23  ;;  %p54_p4 = scmp.eq.s32.totalorder %s2712_s29, 0 }
  0x3f   : > { %s3797_s20 = smov (%p37_p1, %s36_s20), 0  ;;  %s3799_s30 = smov (!%p37_p1, %s39_s30), %s2708_s28 }
  0x40   : > { %3762 = sst [smem:[#allocation20_spill]] %s3797_s20  ;;  %p2892_p7 = por %p54_p4, %p53_p3 }
  0x41   : > { %s154_s17 = ssub.s32 %s2704_s27, %s3797_s20  ;;  %p41_p9 = scmp.ge.s32.totalorder %s3799_s30, 2 }
  0x42   : > { %p3764_p10 = scmp.ne.s32.totalorder %s3753_s11, 0  ;;  %p2399_p2 = scmp.lt.s32.totalorder %s2712_s29, 4 }
  0x43   : > { %s243_s4 = sand.u32 1, %s2692_s24   ;;  %s3801_s30 = smov (%p41_p9, %s3799_s30), 0 }
  0x44   : > { %p2900_p12 = por %p3764_p10, %p53_p3  ;;  %3767 = sst [smem:[#allocation22_spill]] %s3801_s30 }
  0x45   : > { %s1766_s19 = sshll.u32 %s243_s4, 8  ;;  %s43_s9 = ssub.s32 %s2708_s28, %s3801_s30 }
  0x46   : > { %s3765_s16 = scalar_select %p2900_p12, 1, 0 }
  0x47   : > { %p44_p0 = scmp.eq.s32.totalorder %s43_s9, 0  ;;  %s155_s14 = sor.u32 %s154_s17, %s43_s9 }
  0x48   : > { %3766 = sst [smem:[#allocation21_spill]] %s3765_s16  ;;  %p156_p5 = scmp.eq.s32.totalorder %s155_s14, 0 }
  0x49   : > { %s1787_s1 = sshll.u32 %s2708_s28, 12  ;;  %s3768_s11 = sadd.s32 1, %s2680_s3 }
  0x4a   : > { %s2912_s20 = scalar_select %p44_p0, %s2692_s24, %s46_s7  }
  0x4b   : > { %s2917_s27 = scalar_select %p156_p5, %s2680_s3, %s3768_s11  }
  0x4c   : > { %s2922_s6 = scalar_lea.hbm %s3721_s0, %s1787_s1  ;;  %s247_s16 = scalar_lea.vmem [#allocation3], %s1766_s19 }
  0x4d   : > { %s254_s30 = sshll.u32 %s247_s16, 4  ;;  %p2930_p6 = pnand %p2399_p2, %p2892_p7  ;;  %s2924_s30 = int_to_ptr.vmem [resolvable:$true] %s254_s30 }
  0x4e   : > { %s2934_s14 = scalar_lea.sflag [#allocation4], %s243_s4  ;;  %s2524_s1 = scalar_lea.hbm %s2922_s6, 4096 }
  0x4f   : > { %p2525_p8 = scmp.ne.s32.totalorder %s2922_s6, %s2524_s1  ;;  %p2526_p11 = pneg %p2930_p6 }
  0x50   : > { %s2529_s7 = scalar_lea.hbm %s3721_s0, 8192  ;;  %p2530_p3 = scmp.lt.u32.totalorder %s2922_s6, %s3721_s0 }
  0x51   : > { %p2527_p13 = pnand %p2526_p11, %p2525_p8  ;;  %p2531_p4 = scmp.lt.u32.totalorder %s2529_s7, %s2524_s1 }
  0x52   : > { %p2533_p9 = scmp.lt.u32.totalorder %s2524_s1, %s2922_s6 }
  0x53   : > { %p2528_p1 = pneg %p2527_p13  ;;  %p2532_p7 = por %p2531_p4, %p2530_p3 }
  0x55   : > { %p2534_p10 = por %p2533_p9, %p2532_p7 }
  0x57   : > { %p2535_p2 = pnand %p2534_p10, %p2528_p1 }
  0x59   : > { %2538 = shalt.err (!%p2535_p2)
}
  0x5a   : > { %s2539_s16 = scalar_lea.vmem %s2924_s30, 4096  ;;  %s2717_s4 = smov [#allocation3]  }
  0x5b   : > { %p2540_p0 = scmp.ne.s32.totalorder %s2924_s30, %s2539_s16  ;;  %s2544_s19 = sshll.u32 %s2717_s4, 4  ;;  %s2545_s19 = int_to_ptr.vmem [resolvable:$false] %s2544_s19 }
  0x5c   : > { %s2546_s11 = scalar_lea.vmem %s2545_s19, 8192  ;;  %p2547_p13 = scmp.lt.s32.totalorder %s2924_s30, %s2545_s19 }
  0x5d   : > { %p2542_p5 = pnand %p2540_p0, %p2526_p11  ;;  %p2548_p3 = scmp.lt.s32.totalorder %s2546_s11, %s2539_s16 }
  0x5f   : > { %p2543_p8 = pneg %p2542_p5  ;;  %p2549_p4 = por %p2548_p3, %p2547_p13 }
  0x61   : > { %p2550_p7 = pnand %p2549_p4, %p2543_p8 }
  0x63   : > { %2553 = shalt.err (!%p2550_p7)
}
  0x64   : > { %s3770_s1 = smov 8   ;;  %s3771_s21 = smov 128  }
  0x65   : > { %2390 = dma.hbm_to_vmem [thread:$0]  (!%p2930_p6), %s2922_s6, 4096, %s2924_s30, %s2934_s14, %s3771_s21, %s3771_s21, %s3770_s1  }
  0x66   : > { %p3772_p11 = scmp.ne.s32.totalorder %s3759_s15, 0 }
  0x67   : > { %s2968_s13 = sand.u32 (!%p3772_p11), 1, %s2688_s23   ;;  %p3773_p1 = scmp.ne.s32.totalorder (!%p3772_p11), %s3752_s10, 0 }
  0x68   : > { %266 = sbr.rel (%p3772_p11) target bundleno = 616 (0x268), region = 40  ;;  %s1770_s7 = sshll.u32 (!%p3772_p11), %s2968_s13, 8 }
  0x69   : > { %s269_s18 = scalar_lea.sflag (!%p3772_p11), [#allocation4], %s2968_s13  ;;  %s2972_s17 = scalar_lea.vmem (!%p3772_p11), [#allocation3], %s1770_s7 }
  0x6f   : > { %2655 = dma.done.wait (%p3773_p1), %s269_s18, 4096  }
  0x70   : > { %2657 = vsyncadd (%p3773_p1), %s269_s18, 4294963200  ;;  %p3774_p6 = scmp.ne.s32.totalorder %s3751_s8, 0 }
  0x72   : > { %2659 = dma.done.wait (%p3774_p6), [#allocation7], 18432  }
  0x73   : > { %2661 = vsyncadd (%p3774_p6), [#allocation7], 4294948864  ;;  %s300_s6 = sand.u32 1, %s2676_s22   ;;  %s1773_s15 = sshll.u32 %s2968_s13, 1 }
  0x74   : > { %s1772_s30 = sshll.u32 %s300_s6, 7  ;;  %s2988_s14 = scalar_lea.vmem [#allocation9], %s1773_s15 }
  0x75   : > { %s2986_s9 = scalar_lea.vmem [#allocation8], %s1772_s30  ;;  %p1774_p9 = scmp.ne.s32.totalorder %s2696_s25, 0 }
  0x76   : > { %v315_v0 = vld [vmem:[%s2972_s17] sm:$0xff] (!%p1774_p9)  ;;  %v316_v1 = vld [vmem:[%s2972_s17 + $0x8] sm:$0xff] (!%p1774_p9)  ;;  %v317_v2 = vld [vmem:[%s2972_s17 + $0x10] sm:$0xff] (!%p1774_p9)  ;;  %v2718_v3 = vmov (!%p1774_p9), 0.0  }
  0x77   : > { %314 = sbr.rel (%p1774_p9) target bundleno = 163 (0xa3), region = 52  ;;  %350 = vst [vmem:[#allocation2 + $0x18] sm:$0xff] (!%p1774_p9), %v2718_v3  ;;  %347 = vst [vmem:[#allocation2] sm:$0xff] (!%p1774_p9), %v2718_v3  ;;  %v318_v4 = vld [vmem:[%s2972_s17 + $0x18] sm:$0xff] (!%p1774_p9)  ;;  %v319_v5 = vld [vmem:[%s2972_s17 + $0x20] sm:$0xff] (!%p1774_p9) }
  0x78   : > { %348 = vst [vmem:[#allocation2 + $0x8] sm:$0xff] (!%p1774_p9), %v2718_v3  ;;  %349 = vst [vmem:[#allocation2 + $0x10] sm:$0x3] (!%p1774_p9), %v2718_v3  ;;  %v320_v6 = vld [vmem:[%s2972_s17 + $0x28] sm:$0xff] (!%p1774_p9)  ;;  %v321_v7 = vld [vmem:[%s2972_s17 + $0x30] sm:$0xff] (!%p1774_p9) }
  0x79   : > { %351 = vst [vmem:[#allocation2 + $0x20] sm:$0xff] (!%p1774_p9), %v2718_v3  ;;  %352 = vst [vmem:[#allocation2 + $0x28] sm:$0x3] (!%p1774_p9), %v2718_v3  ;;  %v322_v8 = vld [vmem:[%s2972_s17 + $0x38] sm:$0xff] (!%p1774_p9)  ;;  %v323_v9 = vld [vmem:[%s2972_s17 + $0x40] sm:$0xff] (!%p1774_p9) }
  0x7a   : > { %353 = vst [vmem:[#allocation2 + $0x30] sm:$0xff] (!%p1774_p9), %v2718_v3  ;;  %354 = vst [vmem:[#allocation2 + $0x38] sm:$0xff] (!%p1774_p9), %v2718_v3  ;;  %v324_v10 = vld [vmem:[%s2972_s17 + $0x48] sm:$0xff] (!%p1774_p9)  ;;  %v325_v11 = vld [vmem:[%s2972_s17 + $0x50] sm:$0xff] (!%p1774_p9) }
  0x7b   : > { %355 = vst [vmem:[#allocation2 + $0x40] sm:$0x3] (!%p1774_p9), %v2718_v3  ;;  %356 = vst [vmem:[#allocation2 + $0x48] sm:$0xff] (!%p1774_p9), %v2718_v3  ;;  %v326_v12 = vld [vmem:[%s2972_s17 + $0x58] sm:$0xff] (!%p1774_p9)  ;;  %v327_v13 = vld [vmem:[%s2972_s17 + $0x60] sm:$0xff] (!%p1774_p9) }
  0x7c   : > { %357 = vst [vmem:[#allocation2 + $0x50] sm:$0xff] (!%p1774_p9), %v2718_v3  ;;  %358 = vst [vmem:[#allocation2 + $0x58] sm:$0x3] (!%p1774_p9), %v2718_v3  ;;  %v328_v14 = vld [vmem:[%s2972_s17 + $0x68] sm:$0xff] (!%p1774_p9)  ;;  %v329_v15 = vld [vmem:[%s2972_s17 + $0x70] sm:$0xff] (!%p1774_p9) }
  0x7d   : > { %359 = vst [vmem:[#allocation2 + $0x60] sm:$0xff] (!%p1774_p9), %v2718_v3  ;;  %360 = vst [vmem:[#allocation2 + $0x68] sm:$0xff] (!%p1774_p9), %v2718_v3  ;;  %v330_v16 = vld [vmem:[%s2972_s17 + $0x78] sm:$0xff] (!%p1774_p9)  ;;  %v331_v17 = vld [vmem:[%s2972_s17 + $0x80] sm:$0xff] (!%p1774_p9) }
  0x7e   : > { %361 = vst [vmem:[#allocation2 + $0x70] sm:$0x3] %v2718_v3  ;;  %362 = vst [vmem:[#allocation2 + $0x78] sm:$0xff] %v2718_v3  ;;  %v332_v18 = vld [vmem:[%s2972_s17 + $0x88] sm:$0xff]  ;;  %v333_v19 = vld [vmem:[%s2972_s17 + $0x90] sm:$0xff] }
  0x7f   : > { %363 = vst [vmem:[#allocation2 + $0x80] sm:$0xff] %v2718_v3  ;;  %364 = vst [vmem:[#allocation2 + $0x88] sm:$0x3] %v2718_v3  ;;  %v334_v20 = vld [vmem:[%s2972_s17 + $0x98] sm:$0xff]  ;;  %v335_v21 = vld [vmem:[%s2972_s17 + $0xa0] sm:$0xff] }
  0x80   : > { %365 = vst [vmem:[#allocation2 + $0x90] sm:$0xff] %v2718_v3  ;;  %366 = vst [vmem:[#allocation2 + $0x98] sm:$0xff] %v2718_v3  ;;  %v336_v22 = vld [vmem:[%s2972_s17 + $0xa8] sm:$0xff]  ;;  %v337_v23 = vld [vmem:[%s2972_s17 + $0xb0] sm:$0xff] }
  0x81   : > { %367 = vst [vmem:[#allocation2 + $0xa0] sm:$0x3] %v2718_v3  ;;  %368 = vst [vmem:[#allocation2 + $0xa8] sm:$0xff] %v2718_v3  ;;  %v338_v24 = vld [vmem:[%s2972_s17 + $0xb8] sm:$0xff]  ;;  %v339_v25 = vld [vmem:[%s2972_s17 + $0xc0] sm:$0xff] }
  0x82   : > { %369 = vst [vmem:[#allocation2 + $0xb0] sm:$0xff] %v2718_v3  ;;  %370 = vst [vmem:[#allocation2 + $0xb8] sm:$0x3] %v2718_v3  ;;  %v340_v26 = vld [vmem:[%s2972_s17 + $0xc8] sm:$0xff]  ;;  %v341_v27 = vld [vmem:[%s2972_s17 + $0xd0] sm:$0xff] }
  0x83   : > { %371 = vst [vmem:[#allocation2 + $0xc0] sm:$0xff] %v2718_v3  ;;  %372 = vst [vmem:[#allocation2 + $0xc8] sm:$0xff] %v2718_v3  ;;  %v342_v28 = vld [vmem:[%s2972_s17 + $0xd8] sm:$0xff]  ;;  %v343_v29 = vld [vmem:[%s2972_s17 + $0xe0] sm:$0xff] }
  0x84   : > { %373 = vst [vmem:[#allocation2 + $0xd0] sm:$0x3] %v2718_v3  ;;  %374 = vst [vmem:[#allocation2 + $0xd8] sm:$0xff] %v2718_v3  ;;  %v344_v30 = vld [vmem:[%s2972_s17 + $0xe8] sm:$0xff]  ;;  %v345_v31 = vld [vmem:[%s2972_s17 + $0xf0] sm:$0xff] }
  0x85   : > { %375 = vst [vmem:[#allocation2 + $0xe0] sm:$0xff] %v2718_v3  ;;  %376 = vst [vmem:[#allocation2 + $0xe8] sm:$0x3] %v2718_v3  ;;  %v346_v32 = vld [vmem:[%s2972_s17 + $0xf8] sm:$0xff] }
  0x86   : > { %377 = vst [vmem:[#allocation2 + $0xf0] sm:$0xff] %v2718_v3  ;;  %378 = vst [vmem:[#allocation2 + $0xf8] sm:$0xff] %v2718_v3 }
  0x87   : > { %379 = vst [vmem:[#allocation2 + $0x100] sm:$0x3] %v2718_v3  ;;  %380 = vst [vmem:[#allocation2 + $0x108] sm:$0xff] %v2718_v3 }
  0x88   : > { %381 = vst [vmem:[#allocation2 + $0x110] sm:$0xff] %v2718_v3  ;;  %382 = vst [vmem:[#allocation2 + $0x118] sm:$0x3] %v2718_v3 }
  0x89   : > { %383 = vst [vmem:[#allocation2 + $0x120] sm:$0xff] %v2718_v3  ;;  %384 = vst [vmem:[#allocation2 + $0x128] sm:$0xff] %v2718_v3 }
  0x8a   : > { %385 = vst [vmem:[#allocation2 + $0x130] sm:$0x3] %v2718_v3  ;;  %386 = vst [vmem:[#allocation2 + $0x138] sm:$0xff] %v2718_v3 }
  0x8b   : > { %387 = vst [vmem:[#allocation2 + $0x140] sm:$0xff] %v2718_v3  ;;  %388 = vst [vmem:[#allocation2 + $0x148] sm:$0x3] %v2718_v3 }
  0x8c   : > { %389 = vst [vmem:[#allocation2 + $0x150] sm:$0xff] %v2718_v3  ;;  %390 = vst [vmem:[#allocation2 + $0x158] sm:$0xff] %v2718_v3 }
  0x8d   : > { %391 = vst [vmem:[#allocation2 + $0x160] sm:$0x3] %v2718_v3  ;;  %392 = vst [vmem:[#allocation2 + $0x168] sm:$0xff] %v2718_v3 }
  0x8e   : > { %393 = vst [vmem:[#allocation2 + $0x170] sm:$0xff] %v2718_v3  ;;  %394 = vst [vmem:[#allocation2 + $0x178] sm:$0x3] %v2718_v3 }
  0x8f   : > { %395 = vst [vmem:[#allocation2 + $0x180] sm:$0xff] %v2718_v3  ;;  %396 = vst [vmem:[#allocation2 + $0x188] sm:$0xff] %v2718_v3 }
  0x90   : > { %397 = vst [vmem:[#allocation2 + $0x190] sm:$0x3] %v2718_v3  ;;  %398 = vst [vmem:[#allocation2 + $0x198] sm:$0xff] %v2718_v3 }
  0x91   : > { %399 = vst [vmem:[#allocation2 + $0x1a0] sm:$0xff] %v2718_v3  ;;  %400 = vst [vmem:[#allocation2 + $0x1a8] sm:$0x3] %v2718_v3 }
  0x92   : > { %434 = vst [vmem:[%s2988_s14] sm:$0x3] %v2718_v3  ;;  %402 = vst [vmem:[#allocation2 + $0x19] sm:$0xff] %v315_v0 }
  0x93   : > { %403 = vst [vmem:[#allocation2 + $0x21] sm:$0xff] %v316_v1  ;;  %404 = vst [vmem:[#allocation2 + $0x31] sm:$0xff] %v317_v2 }
  0x94   : > { %405 = vst [vmem:[#allocation2 + $0x39] sm:$0xff] %v318_v4  ;;  %406 = vst [vmem:[#allocation2 + $0x49] sm:$0xff] %v319_v5 }
  0x95   : > { %407 = vst [vmem:[#allocation2 + $0x51] sm:$0xff] %v320_v6  ;;  %408 = vst [vmem:[#allocation2 + $0x61] sm:$0xff] %v321_v7 }
  0x96   : > { %409 = vst [vmem:[#allocation2 + $0x69] sm:$0xff] %v322_v8  ;;  %410 = vst [vmem:[#allocation2 + $0x79] sm:$0xff] %v323_v9 }
  0x97   : > { %411 = vst [vmem:[#allocation2 + $0x81] sm:$0xff] %v324_v10  ;;  %412 = vst [vmem:[#allocation2 + $0x91] sm:$0xff] %v325_v11 }
  0x98   : > { %413 = vst [vmem:[#allocation2 + $0x99] sm:$0xff] %v326_v12  ;;  %414 = vst [vmem:[#allocation2 + $0xa9] sm:$0xff] %v327_v13 }
  0x99   : > { %415 = vst [vmem:[#allocation2 + $0xb1] sm:$0xff] %v328_v14  ;;  %416 = vst [vmem:[#allocation2 + $0xc1] sm:$0xff] %v329_v15 }
  0x9a   : > { %417 = vst [vmem:[#allocation2 + $0xc9] sm:$0xff] %v330_v16  ;;  %418 = vst [vmem:[#allocation2 + $0xd9] sm:$0xff] %v331_v17 }
  0x9b   : > { %419 = vst [vmem:[#allocation2 + $0xe1] sm:$0xff] %v332_v18  ;;  %420 = vst [vmem:[#allocation2 + $0xf1] sm:$0xff] %v333_v19 }
  0x9c   : > { %421 = vst [vmem:[#allocation2 + $0xf9] sm:$0xff] %v334_v20  ;;  %422 = vst [vmem:[#allocation2 + $0x109] sm:$0xff] %v335_v21 }
  0x9d   : > { %423 = vst [vmem:[#allocation2 + $0x111] sm:$0xff] %v336_v22  ;;  %424 = vst [vmem:[#allocation2 + $0x121] sm:$0xff] %v337_v23 }
  0x9e   : > { %425 = vst [vmem:[#allocation2 + $0x129] sm:$0xff] %v338_v24  ;;  %426 = vst [vmem:[#allocation2 + $0x139] sm:$0xff] %v339_v25 }
  0x9f   : > { %427 = vst [vmem:[#allocation2 + $0x141] sm:$0xff] %v340_v26  ;;  %428 = vst [vmem:[#allocation2 + $0x151] sm:$0xff] %v341_v27 }
  0xa0   : > { %429 = vst [vmem:[#allocation2 + $0x159] sm:$0xff] %v342_v28  ;;  %430 = vst [vmem:[#allocation2 + $0x169] sm:$0xff] %v343_v29 }
  0xa1   : > { %431 = vst [vmem:[#allocation2 + $0x171] sm:$0xff] %v344_v30  ;;  %432 = vst [vmem:[#allocation2 + $0x181] sm:$0xff] %v345_v31 }
  0xa2   : > { %433 = vst [vmem:[#allocation2 + $0x189] sm:$0xff] %v346_v32 }
  0xa3 PF: > { %v656_v33 = vld [vmem:[#allocation6 + $0x80] sm:$0xff]  ;;  %v657_v34 = vld [vmem:[#allocation6 + $0x88] sm:$0xff]  ;;  %v658_v44 = vld [vmem:[#allocation6 + $0x90] sm:$0xff]  ;;  %s1776_s8 = smul.u32 192, %s2696_s25  ;;  %vm492_vm0 = vcmask 1046528   ;;  %vm549_vm1 = vcmask 1045504  }
  0xa4   : > { %v688_v35 = vld [vmem:[#allocation6 + $0x180] sm:$0xff]  ;;  %v2197_v36 = vpack.c.bf16 %v657_v34, %v656_v33  ;;  %v689_v37 = vld [vmem:[#allocation6 + $0x188] sm:$0xff]  ;;  %v659_v46 = vld [vmem:[#allocation6 + $0x98] sm:$0xff]  ;;  %s1788_s19 = sshll.u32 %s2696_s25, 4  ;;  %s1782_s11 = sshll.u32 %s2700_s26, 5 }
  0xa5   : > { %v640_v38 = vld [vmem:[#allocation6] sm:$0xff]  ;;  %v641_v39 = vld [vmem:[#allocation6 + $0x8] sm:$0xff]  ;;  %v2229_v40 = vpack.c.bf16 %v689_v37, %v688_v35  ;;  %v690_v47 = vld [vmem:[#allocation6 + $0x190] sm:$0xff]  ;;  %v2201_v49 = vpack.c.bf16 %v659_v46, %v658_v44  ;;  %s3025_s10 = scalar_lea.vmem [#allocation2], %s1776_s8  ;;  %s3567_s25 = sadd.s32 %s1788_s19, %s1782_s11 }
  0xa6   : > { %v2199_v41 = vpack.c.bf16 %v641_v39, %v640_v38  ;;  %v672_v42 = vld [vmem:[#allocation6 + $0x100] sm:$0xff]  ;;  %v673_v43 = vld [vmem:[#allocation6 + $0x108] sm:$0xff]  ;;  %2198 = vmatprep.subr.bf16.mxu0 %v2197_v36  ;;  %v691_v48 = vld [vmem:[#allocation6 + $0x198] sm:$0xff]  ;;  %s1617_s1 = sshll.u32 %s2986_s9, 4  ;;  %s1783_s21 = sshll.u32 %s3567_s25, 7  ;;  %s3587_s1 = int_to_ptr.vmem [resolvable:$true] %s1617_s1 }
  0xa7   : > { %v2231_v45 = vpack.c.bf16 %v673_v43, %v672_v42  ;;  %2230 = vmatprep.subr.bf16.mxu1 %v2229_v40  ;;  %v2233_v50 = vpack.c.bf16 %v691_v48, %v690_v47  ;;  %v642_v51 = vld [vmem:[#allocation6 + $0x10] sm:$0xff]  ;;  %v643_v52 = vld [vmem:[#allocation6 + $0x18] sm:$0xff]  ;;  %v660_v56 = vld [vmem:[#allocation6 + $0xa0] sm:$0xff]  ;;  %s3594_s17 = scalar_lea.hbm %s3726_s5, %s1783_s21  ;;  %s3602_s15 = scalar_lea.sflag [#allocation5], %s300_s6 }
  0xa8   : > { %2200 = vmatpush3.bf16.msra.mxu0 %v2199_v41  ;;  %v674_v53 = vld [vmem:[#allocation6 + $0x110] sm:$0xff]  ;;  %v2203_v54 = vpack.c.bf16 %v643_v52, %v642_v51  ;;  %v675_v55 = vld [vmem:[#allocation6 + $0x118] sm:$0xff]  ;;  %v661_v57 = vld [vmem:[#allocation6 + $0xa8] sm:$0xff]  ;;  %s2554_s30 = scalar_lea.vmem %s3587_s1, 2048  ;;  %p3775_p2 = scmp.ne.s32.totalorder %s3754_s12, 0 }
  0xa9   : > { %2232 = vmatpush3.bf16.msra.mxu1 %v2231_v45  ;;  %2202 = vmatprep.subr.bf16.mxu0 %v2201_v49  ;;  %v2235_v58 = vpack.c.bf16 %v675_v55, %v674_v53  ;;  %v2205_v59 = vpack.c.bf16 %v661_v57, %v660_v56  ;;  %v692_v60 = vld [vmem:[#allocation6 + $0x1a0] sm:$0xff]  ;;  %v693_v61 = vld [vmem:[#allocation6 + $0x1a8] sm:$0xff]  ;;  %v662_v4 = vld [vmem:[#allocation6 + $0xb0] sm:$0xff]  ;;  %p2555_p10 = scmp.ne.s32.totalorder %s3587_s1, %s2554_s30  ;;  %s2719_s8 = smov [#allocation8]  }
  0xaa   : > { %2234 = vmatprep.subr.bf16.mxu1 %v2233_v50  ;;  %v644_v62 = vld [vmem:[#allocation6 + $0x20] sm:$0xff]  ;;  %v2237_v63 = vpack.c.bf16 %v693_v61, %v692_v60  ;;  %v645_v0 = vld [vmem:[#allocation6 + $0x28] sm:$0xff]  ;;  %v663_v5 = vld [vmem:[#allocation6 + $0xb8] sm:$0xff] }
  0xab   : > { %v676_v1 = vld [vmem:[#allocation6 + $0x120] sm:$0xff]  ;;  %v677_v2 = vld [vmem:[#allocation6 + $0x128] sm:$0xff]  ;;  %v2207_v3 = vpack.c.bf16 %v645_v0, %v644_v62  ;;  %v694_v6 = vld [vmem:[#allocation6 + $0x1b0] sm:$0xff]  ;;  %v2209_v8 = vpack.c.bf16 %v663_v5, %v662_v4  ;;  %p2556_p0 = pnand %p2555_p10, %p3775_p2 }
  0xac   : > { %2204 = vmatpush3.bf16.msra.mxu0 %v2203_v54  ;;  %v2239_v7 = vpack.c.bf16 %v677_v2, %v676_v1  ;;  %v695_v9 = vld [vmem:[#allocation6 + $0x1b8] sm:$0xff]  ;;  %v646_v10 = vld [vmem:[#allocation6 + $0x30] sm:$0xff]  ;;  %v664_v15 = vld [vmem:[#allocation6 + $0xc0] sm:$0xff] }
  0xad   : > { %2236 = vmatpush3.bf16.msra.mxu1 %v2235_v58  ;;  %2206 = vmatprep.subr.bf16.mxu0 %v2205_v59  ;;  %v647_v11 = vld [vmem:[#allocation6 + $0x38] sm:$0xff]  ;;  %v2241_v12 = vpack.c.bf16 %v695_v9, %v694_v6  ;;  %v678_v13 = vld [vmem:[#allocation6 + $0x130] sm:$0xff]  ;;  %v665_v16 = vld [vmem:[#allocation6 + $0xc8] sm:$0xff]  ;;  %p2557_p5 = pneg %p2556_p0 }
  0xae   : > { %2238 = vmatprep.subr.bf16.mxu1 %v2237_v63  ;;  %v679_v14 = vld [vmem:[#allocation6 + $0x138] sm:$0xff]  ;;  %v696_v17 = vld [vmem:[#allocation6 + $0x1c0] sm:$0xff]  ;;  %v697_v18 = vld [vmem:[#allocation6 + $0x1c8] sm:$0xff]  ;;  %v2211_v19 = vpack.c.bf16 %v647_v11, %v646_v10  ;;  %v2213_v21 = vpack.c.bf16 %v665_v16, %v664_v15 }
  0xaf   : > { %v2243_v20 = vpack.c.bf16 %v679_v14, %v678_v13  ;;  %v648_v22 = vld [vmem:[#allocation6 + $0x40] sm:$0xff]  ;;  %v649_v23 = vld [vmem:[#allocation6 + $0x48] sm:$0xff]  ;;  %v2245_v25 = vpack.c.bf16 %v697_v18, %v696_v17  ;;  %v666_v27 = vld [vmem:[#allocation6 + $0xd0] sm:$0xff] }
  0xb0   : > { %2208 = vmatpush3.bf16.msra.mxu0 %v2207_v3  ;;  %v680_v24 = vld [vmem:[#allocation6 + $0x140] sm:$0xff]  ;;  %v681_v26 = vld [vmem:[#allocation6 + $0x148] sm:$0xff]  ;;  %v667_v28 = vld [vmem:[#allocation6 + $0xd8] sm:$0xff]  ;;  %v2215_v31 = vpack.c.bf16 %v649_v23, %v648_v22 }
  0xb1   : > { %2240 = vmatpush3.bf16.msra.mxu1 %v2239_v7  ;;  %2210 = vmatprep.subr.bf16.mxu0 %v2209_v8  ;;  %v698_v29 = vld [vmem:[#allocation6 + $0x1d0] sm:$0xff]  ;;  %v699_v30 = vld [vmem:[#allocation6 + $0x1d8] sm:$0xff]  ;;  %v2247_v32 = vpack.c.bf16 %v681_v26, %v680_v24  ;;  %v2217_v33 = vpack.c.bf16 %v667_v28, %v666_v27  ;;  %v668_v39 = vld [vmem:[#allocation6 + $0xe0] sm:$0xff] }
  0xb2   : > { %2242 = vmatprep.subr.bf16.mxu1 %v2241_v12  ;;  %v650_v34 = vld [vmem:[#allocation6 + $0x50] sm:$0xff]  ;;  %v651_v35 = vld [vmem:[#allocation6 + $0x58] sm:$0xff]  ;;  %v2249_v37 = vpack.c.bf16 %v699_v30, %v698_v29  ;;  %v669_v40 = vld [vmem:[#allocation6 + $0xe8] sm:$0xff] }
  0xb3   : > { %v682_v36 = vld [vmem:[#allocation6 + $0x150] sm:$0xff]  ;;  %v683_v38 = vld [vmem:[#allocation6 + $0x158] sm:$0xff]  ;;  %v700_v41 = vld [vmem:[#allocation6 + $0x1e0] sm:$0xff]  ;;  %v2219_v43 = vpack.c.bf16 %v651_v35, %v650_v34  ;;  %v2221_v48 = vpack.c.bf16 %v669_v40, %v668_v39 }
  0xb4   : > { %2212 = vmatpush3.bf16.msra.mxu0 %v2211_v19  ;;  %v701_v42 = vld [vmem:[#allocation6 + $0x1e8] sm:$0xff]  ;;  %v652_v44 = vld [vmem:[#allocation6 + $0x60] sm:$0xff]  ;;  %v2251_v47 = vpack.c.bf16 %v683_v38, %v682_v36  ;;  %v3028_v50 = vld [vmem:[%s3025_s10] sm:$0xff] }
  0xb5   : > { %2244 = vmatpush3.bf16.msra.mxu1 %v2243_v20  ;;  %2214 = vmatprep.subr.bf16.mxu0 %v2213_v21  ;;  %v653_v45 = vld [vmem:[#allocation6 + $0x68] sm:$0xff]  ;;  %v684_v46 = vld [vmem:[#allocation6 + $0x160] sm:$0xff]  ;;  %v3031_v51 = vld [vmem:[%s3025_s10 + $0x8] sm:$0xff]  ;;  %v2253_v52 = vpack.c.bf16 %v701_v42, %v700_v41  ;;  %v493_v55 = vrot.slane %v3028_v50, 1  ;;  %v550_v12 = vrot.slane %v3028_v50, 2 }
  0xb6   : > { %2246 = vmatprep.subr.bf16.mxu1 %v2245_v25  ;;  %v685_v49 = vld [vmem:[#allocation6 + $0x168] sm:$0xff]  ;;  %v670_v53 = vld [vmem:[#allocation6 + $0xf0] sm:$0xff]  ;;  %v671_v54 = vld [vmem:[#allocation6 + $0xf8] sm:$0xff]  ;;  %v494_v56 = vrot.slane %v3031_v51, 1  ;;  %v2223_v60 = vpack.c.bf16 %v653_v45, %v652_v44  ;;  %v551_v13 = vrot.slane %v3031_v51, 2 }
  0xb7   : > { %v3036_v57 = vld [vmem:[%s3025_s10 + $0x18] sm:$0xff]  ;;  %v702_v58 = vld [vmem:[#allocation6 + $0x1f0] sm:$0xff]  ;;  %v703_v59 = vld [vmem:[#allocation6 + $0x1f8] sm:$0xff]  ;;  %v2255_v62 = vpack.c.bf16 %v685_v49, %v684_v46  ;;  %v2225_v63 = vpack.c.bf16 %v671_v54, %v670_v53 }
  0xb8   : > { %2216 = vmatpush3.bf16.msra.mxu0 %v2215_v31  ;;  %1000 = vmatprep.mubr.f32.mxu1 %v3036_v57  ;;  %v495_v61 = vsel %vm492_vm0, %v493_v55, %v494_v56  ;;  %v654_v0 = vld [vmem:[#allocation6 + $0x70] sm:$0xff]  ;;  %v655_v1 = vld [vmem:[#allocation6 + $0x78] sm:$0xff]  ;;  %v2257_v3 = vpack.c.bf16 %v703_v59, %v702_v58  ;;  %v720_v5 = vld [vmem:[#allocation6 + $0x280] sm:$0xff]  ;;  %v552_v27 = vsel %vm549_vm1, %v550_v12, %v551_v13  ;;  %v498_v29 = vrot.slane %v3036_v57, 1 }
  0xb9   : > { %2248 = vmatpush3.bf16.msra.mxu1 %v2247_v32  ;;  %2218 = vmatprep.subr.bf16.mxu0 %v2217_v33  ;;  %v686_v2 = vld [vmem:[#allocation6 + $0x170] sm:$0xff]  ;;  %v687_v4 = vld [vmem:[#allocation6 + $0x178] sm:$0xff]  ;;  %v721_v6 = vld [vmem:[#allocation6 + $0x288] sm:$0xff]  ;;  %v2227_v9 = vpack.c.bf16 %v655_v1, %v654_v0  ;;  %v555_v42 = vrot.slane %v3036_v57, 2 }
  0xba   : > { %2250 = vmatprep.subr.bf16.mxu1 %v2249_v37  ;;  %855 = vmatprep.mubr.f32.mxu0 %v495_v61  ;;  %v440_v7 = vld [vmem:[%s3025_s10 + $0x10] sm:$0x3]  ;;  %v753_v10 = vld [vmem:[#allocation6 + $0x388] sm:$0xff]  ;;  %v2259_v11 = vpack.c.bf16 %v687_v4, %v686_v2  ;;  %v2261_v14 = vpack.c.bf16 %v721_v6, %v720_v5  ;;  %v3044_v18 = vld [vmem:[%s3025_s10 + $0x20] sm:$0xff] }
  0xbb   : > { %v752_v8 = vld [vmem:[#allocation6 + $0x380] sm:$0xff]  ;;  %v705_v16 = vld [vmem:[#allocation6 + $0x208] sm:$0xff]  ;;  %v496_v17 = vrot.slane %v440_v7, 1  ;;  %v722_v19 = vld [vmem:[#allocation6 + $0x290] sm:$0xff]  ;;  %v553_v28 = vrot.slane %v440_v7, 2  ;;  %v499_v30 = vrot.slane %v3044_v18, 1 }
  0xbc   : > { %2220 = vmatpush3.bf16.msra.mxu0 %v2219_v43  ;;  %v704_v15 = vld [vmem:[#allocation6 + $0x200] sm:$0xff]  ;;  %v2293_v20 = vpack.c.bf16 %v753_v10, %v752_v8  ;;  %v723_v21 = vld [vmem:[#allocation6 + $0x298] sm:$0xff]  ;;  %v737_v23 = vld [vmem:[#allocation6 + $0x308] sm:$0xff]  ;;  %v556_v43 = vrot.slane %v3044_v18, 2 }
  0xbd   : > { %2252 = vmatpush3.bf16.msra.mxu1 %v2251_v47  ;;  %2222 = vmatprep.subr.bf16.mxu0 %v2221_v48  ;;  %v736_v22 = vld [vmem:[#allocation6 + $0x300] sm:$0xff]  ;;  %v2263_v24 = vpack.c.bf16 %v705_v16, %v704_v15  ;;  %v754_v25 = vld [vmem:[#allocation6 + $0x390] sm:$0xff]  ;;  %v755_v26 = vld [vmem:[#allocation6 + $0x398] sm:$0xff]  ;;  %v497_v32 = vsel %vm492_vm0, %v494_v56, %v496_v17  ;;  %v2265_v33 = vpack.c.bf16 %v723_v21, %v722_v19 }
  0xbe   : > { %2254 = vmatprep.subr.bf16.mxu1 %v2253_v52  ;;  %v706_v31 = vld [vmem:[#allocation6 + $0x210] sm:$0xff]  ;;  %v707_v34 = vld [vmem:[#allocation6 + $0x218] sm:$0xff]  ;;  %v724_v36 = vld [vmem:[#allocation6 + $0x2a0] sm:$0xff]  ;;  %v2295_v37 = vpack.c.bf16 %v737_v23, %v736_v22  ;;  %v2297_v39 = vpack.c.bf16 %v755_v26, %v754_v25  ;;  %v554_v46 = vsel %vm549_vm1, %v551_v13, %v553_v28  ;;  %v3059_v47 = vsel %vm492_vm0, %v498_v29, %v499_v30 }
  0xbf   : > { %v3051_v35 = vld [vmem:[%s3025_s10 + $0x28] sm:$0x3]  ;;  %v725_v38 = vld [vmem:[#allocation6 + $0x2a8] sm:$0xff]  ;;  %v738_v40 = vld [vmem:[#allocation6 + $0x310] sm:$0xff]  ;;  %v2267_v49 = vpack.c.bf16 %v707_v34, %v706_v31 }
  0xc0   : > { %2224 = vmatpush3.bf16.msra.mxu0 %v2223_v60  ;;  %v739_v41 = vld [vmem:[#allocation6 + $0x318] sm:$0xff]  ;;  %v756_v44 = vld [vmem:[#allocation6 + $0x3a0] sm:$0xff]  ;;  %v757_v45 = vld [vmem:[#allocation6 + $0x3a8] sm:$0xff]  ;;  %v2269_v53 = vpack.c.bf16 %v725_v38, %v724_v36 }
  0xc1   : > { %2256 = vmatpush3.bf16.msra.mxu1 %v2255_v62  ;;  %2226 = vmatprep.subr.bf16.mxu0 %v2225_v63  ;;  %v3062_v48 = vld [vmem:[%s3025_s10 + $0x30] sm:$0xff]  ;;  %v3066_v52 = vld [vmem:[%s3025_s10 + $0x38] sm:$0xff]  ;;  %v726_v56 = vld [vmem:[#allocation6 + $0x2b0] sm:$0xff]  ;;  %v2299_v58 = vpack.c.bf16 %v739_v41, %v738_v40  ;;  %v2301_v60 = vpack.c.bf16 %v757_v45, %v756_v44  ;;  %v3071_v63 = vsel %vm549_vm1, %v555_v42, %v556_v43 }
  0xc2   : > { %2258 = vmatprep.subr.bf16.mxu1 %v2257_v3  ;;  %v708_v54 = vld [vmem:[#allocation6 + $0x220] sm:$0xff]  ;;  %v709_v55 = vld [vmem:[#allocation6 + $0x228] sm:$0xff]  ;;  %v727_v59 = vld [vmem:[#allocation6 + $0x2b8] sm:$0xff]  ;;  %v503_v0 = vrot.slane %v3062_v48, 1  ;;  %v558_v3 = vrot.slane %v3051_v35, 2  ;;  %v504_v4 = vrot.slane %v3066_v52, 1 }
  0xc3   : > { %v740_v61 = vld [vmem:[#allocation6 + $0x320] sm:$0xff]  ;;  %v741_v62 = vld [vmem:[#allocation6 + $0x328] sm:$0xff]  ;;  %v758_v1 = vld [vmem:[#allocation6 + $0x3b0] sm:$0xff]  ;;  %v2271_v5 = vpack.c.bf16 %v709_v55, %v708_v54  ;;  %v2273_v7 = vpack.c.bf16 %v727_v59, %v726_v56  ;;  %v560_v16 = vrot.slane %v3062_v48, 2  ;;  %v561_v17 = vrot.slane %v3066_v52, 2 }
  0xc4   : > { %2228 = vmatpush3.bf16.msra.mxu0 %v2227_v9  ;;  %v759_v2 = vld [vmem:[#allocation6 + $0x3b8] sm:$0xff]  ;;  %v3081_v6 = vld [vmem:[%s3025_s10 + $0x40] sm:$0x3]  ;;  %v728_v10 = vld [vmem:[#allocation6 + $0x2c0] sm:$0xff]  ;;  %v3093_v21 = vsel %vm492_vm0, %v503_v0, %v504_v4 }
  0xc5   : > { %2260 = vmatpush3.bf16.msra.mxu1 %v2259_v11  ;;  %2262 = vmatprep.subr.bf16.mxu0 %v2261_v14  ;;  %v710_v8 = vld [vmem:[#allocation6 + $0x230] sm:$0xff]  ;;  %v711_v9 = vld [vmem:[#allocation6 + $0x238] sm:$0xff]  ;;  %v2303_v11 = vpack.c.bf16 %v741_v62, %v740_v61  ;;  %v729_v12 = vld [vmem:[#allocation6 + $0x2c8] sm:$0xff]  ;;  %v2305_v13 = vpack.c.bf16 %v759_v2, %v758_v1  ;;  %v506_v23 = vrot.slane %v3081_v6, 1 }
  0xc6   : > { %2294 = vmatprep.subr.bf16.mxu1 %v2293_v20  ;;  %v742_v14 = vld [vmem:[#allocation6 + $0x330] sm:$0xff]  ;;  %v743_v15 = vld [vmem:[#allocation6 + $0x338] sm:$0xff]  ;;  %v760_v19 = vld [vmem:[#allocation6 + $0x3c0] sm:$0xff]  ;;  %v2275_v25 = vpack.c.bf16 %v711_v9, %v710_v8 }
  0xc7   : > { %856 = vmatmul.mubr.f32.vlgmr.msra.gmra.mrb[0].mxu0 %v3028_v50  ;;  %v501_v50 = vrot.slane %v3051_v35, 1  ;;  %v761_v20 = vld [vmem:[#allocation6 + $0x3c8] sm:$0xff]  ;;  %v3096_v22 = vld [vmem:[%s3025_s10 + $0x48] sm:$0xff]  ;;  %v712_v26 = vld [vmem:[#allocation6 + $0x240] sm:$0xff]  ;;  %v2307_v31 = vpack.c.bf16 %v743_v15, %v742_v14  ;;  %v3121_v42 = vsel %vm492_vm0, %v504_v4, %v506_v23 }
  0xc8   : > { %1001 = vmatmul.mubr.f32.vlgmr.msra.gmra.mrb[0].mxu1 %v552_v27  ;;  %2264 = vmatpush3.bf16.msra.mxu0 %v2263_v24  ;;  %v3100_v24 = vld [vmem:[%s3025_s10 + $0x50] sm:$0xff]  ;;  %v2277_v27 = vpack.c.bf16 %v729_v12, %v728_v10  ;;  %v713_v28 = vld [vmem:[#allocation6 + $0x248] sm:$0xff]  ;;  %v730_v29 = vld [vmem:[#allocation6 + $0x2d0] sm:$0xff] }
  0xc9   : > { %860 = vmatprep.mubr.f32.mxu0 %v497_v32  ;;  %1005 = vmatprep.mubr.f32.mxu1 %v3044_v18  ;;  %v508_v32 = vrot.slane %v3096_v22, 1  ;;  %v744_v34 = vld [vmem:[#allocation6 + $0x340] sm:$0xff]  ;;  %v745_v35 = vld [vmem:[#allocation6 + $0x348] sm:$0xff]  ;;  %v509_v38 = vrot.slane %v3100_v24, 1  ;;  %v762_v40 = vld [vmem:[#allocation6 + $0x3d0] sm:$0xff]  ;;  %v566_v44 = vrot.slane %v3100_v24, 2  ;;  %v2279_v45 = vpack.c.bf16 %v713_v28, %v712_v26 }
  0xca   : > { %2266 = vmatprep.subr.bf16.mxu0 %v2265_v33  ;;  %2296 = vmatpush3.bf16.msra.mxu1 %v2295_v37  ;;  %v2309_v33 = vpack.c.bf16 %v761_v20, %v760_v19  ;;  %v3105_v36 = vld [vmem:[%s3025_s10 + $0xb0] sm:$0xff]  ;;  %v3112_v37 = vsel %vm549_vm1, %v560_v16, %v561_v17  ;;  %v763_v41 = vld [vmem:[#allocation6 + $0x3d8] sm:$0xff]  ;;  %v2311_v55 = vpack.c.bf16 %v745_v35, %v744_v34  ;;  %v733_v61 = vld [vmem:[#allocation6 + $0x2e8] sm:$0xff] }
  0xcb   : > { %861 = vmatmul.mubr.f32.gmra.mrb[2].mxu0 %v3031_v51  ;;  %2298 = vmatprep.subr.bf16.mxu1 %v2297_v39  ;;  %v3076_v51 = vsel %vm492_vm0, %v499_v30, %v501_v50  ;;  %v731_v30 = vld [vmem:[#allocation6 + $0x2d8] sm:$0xff]  ;;  %v3117_v39 = vld [vmem:[%s3025_s10 + $0x58] sm:$0x3]  ;;  %v3130_v50 = vld [vmem:[%s3025_s10 + $0xc0] sm:$0xff]  ;;  %v529_v56 = vrot.slane %v3105_v36, 1  ;;  %v2313_v62 = vpack.c.bf16 %v763_v41, %v762_v40 }
  0xcc   : > { %1006 = vmatmul.mubr.f32.gmra.mrb[2].mxu1 %v554_v46  ;;  %865 = vmatprep.mubr.f32.mxu0 %v3059_v47  ;;  %v3125_v46 = vld [vmem:[#allocation6 + $0x250] sm:$0xff]  ;;  %v3132_v54 = vld [vmem:[#allocation6 + $0x2e0] sm:$0xff]  ;;  %v3139_v59 = vld [vmem:[%s3025_s10 + $0xc8] sm:$0xff]  ;;  %v616_v4 = vrot.slane %v3130_v50, 2 }
  0xcd   : > { %1010 = vmatprep.mubr.f32.mxu1 %v3062_v48  ;;  %2268 = vmatpush3.bf16.msra.mxu0 %v2267_v49  ;;  %v3127_v49 = vld [vmem:[#allocation6 + $0x258] sm:$0xff]  ;;  %v746_v0 = vld [vmem:[#allocation6 + $0x350] sm:$0xff]  ;;  %v764_v8 = vld [vmem:[#allocation6 + $0x3e0] sm:$0xff]  ;;  %v617_v10 = vrot.slane %v3139_v59, 2  ;;  %v2285_v19 = vpack.c.bf16 %v733_v61, %v3132_v54 }
  0xce   : > { %2270 = vmatprep.subr.bf16.mxu0 %v2269_v53  ;;  %2300 = vmatpush3.bf16.msra.mxu1 %v2299_v58  ;;  %v2281_v53 = vpack.c.bf16 %v731_v30, %v730_v29  ;;  %v3136_v58 = vld [vmem:[%s3025_s10 + $0xb8] sm:$0x3]  ;;  %v747_v1 = vld [vmem:[#allocation6 + $0x358] sm:$0xff]  ;;  %v3163_v12 = vld [vmem:[%s3025_s10 + $0x60] sm:$0xff]  ;;  %v2283_v14 = vpack.c.bf16 %v3127_v49, %v3125_v46 }
  0xcf   : > { %866 = vmatmul.mubr.f32.gmra.mrb[4].mxu0 %v3036_v57  ;;  %2302 = vmatprep.subr.bf16.mxu1 %v2301_v60  ;;  %v3090_v57 = vsel %vm549_vm1, %v556_v43, %v558_v3  ;;  %v565_v43 = vrot.slane %v3096_v22, 2  ;;  %v609_v60 = vrot.slane %v3130_v50, 1  ;;  %v531_v2 = vrot.slane %v3136_v58, 1  ;;  %v765_v9 = vld [vmem:[#allocation6 + $0x3e8] sm:$0xff]  ;;  %v3170_v15 = vld [vmem:[#allocation6 + $0x260] sm:$0xff]  ;;  %v735_v26 = vld [vmem:[#allocation6 + $0x2f8] sm:$0xff] }
  0xd0   : > { %1011 = vmatmul.mubr.f32.gmra.mrb[4].mxu1 %v3071_v63  ;;  %870 = vmatprep.mubr.f32.mxu0 %v3076_v51  ;;  %v610_v3 = vrot.slane %v3139_v59, 1  ;;  %v717_v20 = vld [vmem:[#allocation6 + $0x268] sm:$0xff]  ;;  %v2315_v23 = vpack.c.bf16 %v747_v1, %v746_v0  ;;  %v570_v29 = vrot.slane %v3163_v12, 2  ;;  %v2317_v30 = vpack.c.bf16 %v765_v9, %v764_v8  ;;  %v3205_v40 = vld [vmem:[%s3025_s10 + $0x70] sm:$0x3]  ;;  %v718_v41 = vld [vmem:[#allocation6 + $0x270] sm:$0xff] }
  0xd1   : > { %1015 = vmatprep.mubr.f32.mxu1 %v3066_v52  ;;  %2272 = vmatpush3.bf16.msra.mxu0 %v2271_v5  ;;  %v3175_v16 = vsel %vm492_vm0, %v529_v56, %v531_v2  ;;  %v3186_v28 = vsel %vm549_vm1, %v565_v43, %v566_v44  ;;  %v719_v43 = vld [vmem:[#allocation6 + $0x278] sm:$0xff]  ;;  %v464_v49 = vld [vmem:[%s3025_s10 + $0xd0] sm:$0x3]  ;;  %v769_v9 = vld [vmem:[#allocation6 + $0x408] sm:$0xff] }
  0xd2   : > { %2274 = vmatprep.subr.bf16.mxu0 %v2273_v7  ;;  %2304 = vmatpush3.bf16.msra.mxu1 %v2303_v11  ;;  %v568_v7 = vrot.slane %v3117_v39, 2  ;;  %v3160_v11 = vsel %vm492_vm0, %v508_v32, %v509_v38  ;;  %v749_v32 = vld [vmem:[#allocation6 + $0x368] sm:$0xff]  ;;  %v767_v46 = vld [vmem:[#allocation6 + $0x3f8] sm:$0xff]  ;;  %v612_v54 = vrot.slane %v464_v49, 1  ;;  %v619_v61 = vrot.slane %v464_v49, 2  ;;  %v768_v8 = vld [vmem:[#allocation6 + $0x400] sm:$0xff] }
  0xd3   : > { %871 = vmatmul.mubr.f32.gmra.mrb[6].mxu0 %v3044_v18  ;;  %2306 = vmatprep.subr.bf16.mxu1 %v2305_v13  ;;  %v563_v18 = vrot.slane %v3081_v6, 2  ;;  %v511_v6 = vrot.slane %v3117_v39, 1  ;;  %v3166_v13 = vld [vmem:[%s3025_s10 + $0x68] sm:$0xff] }
  0xd4   : > { %1016 = vmatmul.mubr.f32.gmra.mrb[6].mxu1 %v3090_v57  ;;  %875 = vmatprep.mubr.f32.mxu0 %v3093_v21  ;;  %v3200_v35 = vsel %vm549_vm1, %v566_v44, %v568_v7  ;;  %v571_v39 = vrot.slane %v3166_v13, 2  ;;  %v751_v0 = vld [vmem:[#allocation6 + $0x378] sm:$0xff] }
  0xd5   : > { %1020 = vmatprep.mubr.f32.mxu1 %v3096_v22  ;;  %2276 = vmatpush3.bf16.msra.mxu0 %v2275_v25  ;;  %v3151_v5 = vsel %vm549_vm1, %v561_v17, %v563_v18  ;;  %v513_v17 = vrot.slane %v3163_v12, 1  ;;  %v734_v25 = vld [vmem:[#allocation6 + $0x2f0] sm:$0xff]  ;;  %v3197_v34 = vsel %vm492_vm0, %v509_v38, %v511_v6  ;;  %v514_v18 = vrot.slane %v3166_v13, 1 }
  0xd6   : > { %2278 = vmatprep.subr.bf16.mxu0 %v2277_v27  ;;  %2308 = vmatpush3.bf16.msra.mxu1 %v2307_v31  ;;  %v3182_v27 = vsel %vm492_vm0, %v609_v60, %v610_v3  ;;  %v748_v31 = vld [vmem:[#allocation6 + $0x360] sm:$0xff]  ;;  %v2287_v38 = vpack.c.bf16 %v717_v20, %v3170_v15  ;;  %v2289_v44 = vpack.c.bf16 %v735_v26, %v734_v25  ;;  %v3214_v60 = vld [vmem:[%s3025_s10 + $0xe0] sm:$0xff] }
  0xd7   : > { %876 = vmatmul.mubr.f32.gmra.mrb[8].mxu0 %v3062_v48  ;;  %2310 = vmatprep.subr.bf16.mxu1 %v2309_v33  ;;  %v3190_v33 = vsel %vm549_vm1, %v616_v4, %v617_v10  ;;  %v627_v2 = vrot.slane %v3214_v60, 1  ;;  %v467_v4 = vld [vmem:[%s3025_s10 + $0xe8] sm:$0x3]  ;;  %v3227_v15 = vsel %vm549_vm1, %v617_v10, %v619_v61  ;;  %v3232_v20 = vsel %vm492_vm0, %v513_v17, %v514_v18  ;;  %v3247_v17 = vld [vmem:[%s3025_s10 + $0x80] sm:$0xff] }
  0xd8   : > { %1021 = vmatmul.mubr.f32.gmra.mrb[8].mxu1 %v3112_v37  ;;  %880 = vmatprep.mubr.f32.mxu0 %v3121_v42  ;;  %v634_v25 = vrot.slane %v3214_v60, 2  ;;  %v636_v26 = vrot.slane %v467_v4, 2  ;;  %v2291_v10 = vpack.c.bf16 %v719_v43, %v718_v41  ;;  %v3267_v43 = vsel %vm549_vm1, %v570_v29, %v571_v39 }
  0xd9   : > { %1025 = vmatprep.mubr.f32.mxu1 %v3100_v24  ;;  %2280 = vmatpush3.bf16.msra.mxu0 %v2279_v45  ;;  %v766_v45 = vld [vmem:[#allocation6 + $0x3f0] sm:$0xff]  ;;  %v576_v61 = vrot.slane %v3247_v17, 2 }
  0xda   : > { %2282 = vmatprep.subr.bf16.mxu0 %v2281_v53  ;;  %2312 = vmatpush3.bf16.msra.mxu1 %v2311_v55  ;;  %v750_v53 = vld [vmem:[#allocation6 + $0x370] sm:$0xff]  ;;  %v3211_v55 = vld [vmem:[%s3025_s10 + $0xd8] sm:$0xff]  ;;  %v2321_v7 = vpack.c.bf16 %v767_v46, %v766_v45  ;;  %v3249_v45 = vpack.c.bf16 %v769_v9, %v768_v8  ;;  %v3255_v49 = vsel %vm549_vm1, %v634_v25, %v636_v26 }
  0xdb   : > { %881 = vmatmul.mubr.f32.gmra.mrb[10].mxu0 %v3066_v52  ;;  %2314 = vmatprep.subr.bf16.mxu1 %v2313_v62  ;;  %v2319_v62 = vpack.c.bf16 %v749_v32, %v748_v31  ;;  %v626_v1 = vrot.slane %v3211_v55, 1  ;;  %v633_v6 = vrot.slane %v3211_v55, 2  ;;  %v3244_v32 = vld [vmem:[%s3025_s10 + $0x78] sm:$0xff]  ;;  %v458_v8 = vld [vmem:[%s3025_s10 + $0xa0] sm:$0x3] }
  0xdc   : > { %1026 = vmatmul.mubr.f32.gmra.mrb[10].mxu1 %v3151_v5  ;;  %885 = vmatprep.mubr.f32.mxu0 %v3160_v11  ;;  %v518_v41 = vrot.slane %v3244_v32, 1  ;;  %v575_v29 = vrot.slane %v3244_v32, 2 }
  0xdd   : > { %1030 = vmatprep.mubr.f32.mxu1 %v3163_v12  ;;  %2284 = vmatpush3.bf16.msra.mxu0 %v2283_v14  ;;  %v3224_v14 = vsel %vm492_vm0, %v610_v3, %v612_v54  ;;  %v516_v3 = vrot.slane %v3205_v40, 1  ;;  %v3252_v46 = vsel %vm549_vm1, %v633_v6, %v634_v25  ;;  %v455_v54 = vld [vmem:[%s3025_s10 + $0x88] sm:$0x3] }
  0xde   : > { %2286 = vmatprep.subr.bf16.mxu0 %v2285_v19  ;;  %2316 = vmatpush3.bf16.msra.mxu1 %v2315_v23  ;;  %v629_v19 = vrot.slane %v467_v4, 1  ;;  %v3235_v23 = vsel %vm492_vm0, %v626_v1, %v627_v2  ;;  %v3295_v1 = vld [vmem:[%s3025_s10 + $0x98] sm:$0xff]  ;;  %v578_v6 = vrot.slane %v455_v54, 2 }
  0xdf   : > { %886 = vmatmul.mubr.f32.gmra.mrb[12].mxu0 %v3096_v22  ;;  %2318 = vmatprep.subr.bf16.mxu1 %v2317_v30  ;;  %v2323_v30 = vpack.c.bf16 %v751_v0, %v750_v53  ;;  %v519_v53 = vrot.slane %v3247_v17, 1  ;;  %v3292_v0 = vld [vmem:[%s3025_s10 + $0x90] sm:$0xff]  ;;  %v581_v26 = vrot.slane %v3295_v1, 2 }
  0xe0   : > { %1031 = vmatmul.mubr.f32.gmra.mrb[12].mxu1 %v3186_v28  ;;  %890 = vmatprep.mubr.f32.mxu0 %v3197_v34  ;;  %v3241_v31 = vsel %vm492_vm0, %v627_v2, %v629_v19  ;;  %v523_v2 = vrot.slane %v3292_v0, 1  ;;  %v580_v9 = vrot.slane %v3292_v0, 2  ;;  %v3316_v19 = vsel %vm549_vm1, %v576_v61, %v578_v6 }
  0xe1   : > { %1035 = vmatprep.mubr.f32.mxu1 %v3166_v13  ;;  %2288 = vmatpush3.bf16.msra.mxu0 %v2287_v38  ;;  %v3270_v38 = vsel %vm492_vm0, %v514_v18, %v516_v3  ;;  %v526_v3 = vrot.slane %v458_v8, 1  ;;  %v588_v6 = vrot.slane %v3136_v58, 2 }
  0xe2   : > { %2290 = vmatprep.subr.bf16.mxu0 %v2289_v44  ;;  %2320 = vmatpush3.bf16.msra.mxu1 %v2319_v62  ;;  %v573_v44 = vrot.slane %v3205_v40, 2  ;;  %v3288_v40 = vsel %vm492_vm0, %v518_v41, %v519_v53  ;;  %v521_v62 = vrot.slane %v455_v54, 1 }
  0xe3   : > { %891 = vmatmul.mubr.f32.gmra.mrb[14].mxu0 %v3100_v24  ;;  %2322 = vmatprep.subr.bf16.mxu1 %v2321_v7  ;;  %v524_v7 = vrot.slane %v3295_v1, 1 }
  0xe4   : > { %1036 = vmatmul.mubr.f32.gmra.mrb[14].mxu1 %v3200_v35  ;;  %895 = vmatprep.mubr.f32.mxu0 %v3232_v20  ;;  %v3285_v18 = vsel %vm549_vm1, %v571_v39, %v573_v44  ;;  %v3303_v39 = vsel %vm549_vm1, %v575_v29, %v576_v61  ;;  %v3306_v4 = vsel %vm492_vm0, %v519_v53, %v521_v62  ;;  %v583_v44 = vrot.slane %v458_v8, 2  ;;  %v771_v8 = vld [vmem:[#allocation6 + $0x418] sm:$0xff] }
  0xe5   : > { %1040 = vmatprep.mubr.f32.mxu1 %v3244_v32  ;;  %2292 = vmatpush3.bf16.msra.mxu0 %v2291_v10  ;;  %v3319_v25 = vsel %vm492_vm0, %v523_v2, %v524_v7  ;;  %v3323_v10 = vld [vmem:[%s3025_s10 + $0xa8] sm:$0xff]  ;;  %v3333_v41 = vsel %vm492_vm0, %v524_v7, %v526_v3  ;;  %v586_v62 = vrot.slane %v3105_v36, 2  ;;  %v770_v7 = vld [vmem:[#allocation6 + $0x410] sm:$0xff]  ;;  %s2558_s10 = sshll.u32 %s2719_s8, 4  ;;  %s2559_s10 = int_to_ptr.vmem [resolvable:$false] %s2558_s10 }
  0xe6   : > { %2324 = vmatpush3.bf16.msra.mxu1 %v2323_v30  ;;  %2326 = vmatprep.subr.bf16.mxu0 %v3249_v45  ;;  %v3330_v30 = vsel %vm549_vm1, %v580_v9, %v581_v26  ;;  %v528_v53 = vrot.slane %v3323_v10, 1  ;;  %v3341_v54 = vsel %vm549_vm1, %v581_v26, %v583_v44  ;;  %v585_v61 = vrot.slane %v3323_v10, 2  ;;  %v772_v9 = vld [vmem:[#allocation6 + $0x420] sm:$0xff]  ;;  %v773_v26 = vld [vmem:[#allocation6 + $0x428] sm:$0xff]  ;;  %v775_v44 = vld [vmem:[#allocation6 + $0x438] sm:$0xff]  ;;  %s2560_s16 = scalar_lea.vmem %s2559_s10, 4096  ;;  %p2561_p8 = scmp.lt.s32.totalorder %s3587_s1, %s2559_s10 }
  0xe7   : > { %896 = vmatmul.mubr.f32.gmra.mrb[16].mxu0 %v3163_v12  ;;  %2357 = vmatprep.subr.bf16.mxu1 %v3249_v45  ;;  %v2329_v58 = vpack.c.bf16 %v771_v8, %v770_v7  ;;  %v2333_v3 = vpack.c.bf16 %v773_v26, %v772_v9  ;;  %p2562_p13 = scmp.lt.s32.totalorder %s2560_s16, %s2554_s30 }
  0xe8   : > { %1041 = vmatmul.mubr.f32.gmra.mrb[16].mxu1 %v3267_v43  ;;  %900 = vmatprep.mubr.f32.mxu0 %v3270_v38  ;;  %v3346_v29 = vsel %vm492_vm0, %v528_v53, %v529_v56  ;;  %v3355_v2 = vsel %vm549_vm1, %v585_v61, %v586_v62  ;;  %v3363_v56 = vsel %vm549_vm1, %v586_v62, %v588_v6  ;;  %v781_v53 = vld [vmem:[#allocation6 + $0x468] sm:$0xff]  ;;  %v783_v61 = vld [vmem:[#allocation6 + $0x478] sm:$0xff] }
  0xe9   : > { %1045 = vmatprep.mubr.f32.mxu1 %v3247_v17  ;;  %p2563_p3 = por %p2562_p13, %p2561_p8 }
  0xeb   : > { %901 = vmatmul.mubr.f32.gmra.mrb[18].mxu0 %v3166_v13  ;;  %p2564_p4 = pnand %p2563_p3, %p2557_p5 }
  0xec   : > { %1046 = vmatmul.mubr.f32.gmra.mrb[18].mxu1 %v3285_v18  ;;  %905 = vmatprep.mubr.f32.mxu0 %v3288_v40 }
  0xed   : > { %1050 = vmatprep.mubr.f32.mxu1 %v3292_v0 }
  0xef   : > { %906 = vmatmul.mubr.f32.gmra.mrb[20].mxu0 %v3244_v32 }
  0xf0   : > { %1051 = vmatmul.mubr.f32.gmra.mrb[20].mxu1 %v3303_v39  ;;  %910 = vmatprep.mubr.f32.mxu0 %v3306_v4 }
  0xf1   : > { %1055 = vmatprep.mubr.f32.mxu1 %v3295_v1 }
  0xf3   : > { %911 = vmatmul.mubr.f32.gmra.mrb[22].mxu0 %v3247_v17 }
  0xf4   : > { %1056 = vmatmul.mubr.f32.gmra.mrb[22].mxu1 %v3316_v19  ;;  %915 = vmatprep.mubr.f32.mxu0 %v3319_v25 }
  0xf5   : > { %1060 = vmatprep.mubr.f32.mxu1 %v3323_v10 }
  0xf7   : > { %916 = vmatmul.mubr.f32.gmra.mrb[24].mxu0 %v3292_v0 }
  0xf8   : > { %1061 = vmatmul.mubr.f32.gmra.mrb[24].mxu1 %v3330_v30  ;;  %920 = vmatprep.mubr.f32.mxu0 %v3333_v41 }
  0xf9   : > { %1065 = vmatprep.mubr.f32.mxu1 %v3105_v36 }
  0xfb   : > { %921 = vmatmul.mubr.f32.gmra.mrb[26].mxu0 %v3295_v1 }
  0xfc   : > { %1066 = vmatmul.mubr.f32.gmra.mrb[26].mxu1 %v3341_v54  ;;  %925 = vmatprep.mubr.f32.mxu0 %v3346_v29 }
  0xfd   : > { %1070 = vmatprep.mubr.f32.mxu1 %v3130_v50 }
  0xff   : > { %926 = vmatmul.mubr.f32.gmra.mrb[28].mxu0 %v3323_v10 }
 0x100   : > { %1071 = vmatmul.mubr.f32.gmra.mrb[28].mxu1 %v3355_v2  ;;  %930 = vmatprep.mubr.f32.mxu0 %v3175_v16 }
 0x101   : > { %1075 = vmatprep.mubr.f32.mxu1 %v3139_v59 }
 0x103   : > { %931 = vmatmul.mubr.f32.gmra.mrb[30].mxu0 %v3105_v36 }
 0x104   : > { %1076 = vmatmul.mubr.f32.gmra.mrb[30].mxu1 %v3363_v56  ;;  %1145 = vmatprep.mubr.f32.mxu0 %v3071_v63  ;;  %v774_v63 = vld [vmem:[#allocation6 + $0x430] sm:$0xff] }
 0x105   : > { %1290 = vmatprep.mubr.f32.mxu1 %v3093_v21 }
 0x107   : > { %1146 = vmatmul.mubr.f32.vlgmr.msra.gmra.mrb[32].mxu0 %v3059_v47  ;;  %v2337_v47 = vpack.c.bf16 %v775_v44, %v774_v63 }
 0x108   : > { %1291 = vmatmul.mubr.f32.vlgmr.msra.gmra.mrb[32].mxu1 %v3062_v48  ;;  %2328 = vmatpush3.bf16.msra.mxu0 %v3249_v45  ;;  %v776_v48 = vld [vmem:[#allocation6 + $0x440] sm:$0xff] }
 0x109   : > { %1150 = vmatprep.mubr.f32.mxu0 %v3090_v57  ;;  %1295 = vmatprep.mubr.f32.mxu1 %v3121_v42  ;;  %v777_v57 = vld [vmem:[#allocation6 + $0x448] sm:$0xff] }
 0x10a   : > { %2330 = vmatprep.subr.bf16.mxu0 %v2329_v58  ;;  %2365 = vmatpush3.bf16.msra.mxu1 %v3249_v45  ;;  %v779_v45 = vld [vmem:[#allocation6 + $0x458] sm:$0xff] }
 0x10b   : > { %1151 = vmatmul.mubr.f32.gmra.mrb[34].mxu0 %v3076_v51  ;;  %2358 = vmatprep.subr.bf16.mxu1 %v2329_v58  ;;  %v778_v51 = vld [vmem:[#allocation6 + $0x450] sm:$0xff] }
 0x10c   : > { %1296 = vmatmul.mubr.f32.gmra.mrb[34].mxu1 %v3066_v52  ;;  %1155 = vmatprep.mubr.f32.mxu0 %v3112_v37  ;;  %v2341_v52 = vpack.c.bf16 %v777_v57, %v776_v48 }
 0x10d   : > { %1300 = vmatprep.mubr.f32.mxu1 %v3160_v11  ;;  %2332 = vmatpush3.bf16.msra.mxu0 %v2329_v58 }
 0x10e   : > { %2334 = vmatprep.subr.bf16.mxu0 %v2333_v3  ;;  %2366 = vmatpush3.bf16.msra.mxu1 %v2329_v58 }
 0x10f   : > { %1156 = vmatmul.mubr.f32.gmra.mrb[36].mxu0 %v3093_v21  ;;  %2359 = vmatprep.subr.bf16.mxu1 %v2333_v3  ;;  %v2345_v21 = vpack.c.bf16 %v779_v45, %v778_v51 }
 0x110   : > { %1301 = vmatmul.mubr.f32.gmra.mrb[36].mxu1 %v3096_v22  ;;  %1160 = vmatprep.mubr.f32.mxu0 %v3151_v5  ;;  %v780_v22 = vld [vmem:[#allocation6 + $0x460] sm:$0xff] }
 0x111   : > { %1305 = vmatprep.mubr.f32.mxu1 %v3197_v34  ;;  %2336 = vmatpush3.bf16.msra.mxu0 %v2333_v3 }
 0x112   : > { %2338 = vmatprep.subr.bf16.mxu0 %v2337_v47  ;;  %2367 = vmatpush3.bf16.msra.mxu1 %v2333_v3 }
 0x113   : > { %1161 = vmatmul.mubr.f32.gmra.mrb[38].mxu0 %v3121_v42  ;;  %2360 = vmatprep.subr.bf16.mxu1 %v2337_v47  ;;  %v782_v42 = vld [vmem:[#allocation6 + $0x470] sm:$0xff] }
 0x114   : > { %1306 = vmatmul.mubr.f32.gmra.mrb[38].mxu1 %v3100_v24  ;;  %1165 = vmatprep.mubr.f32.mxu0 %v3186_v28  ;;  %v2349_v24 = vpack.c.bf16 %v781_v53, %v780_v22 }
 0x115   : > { %1310 = vmatprep.mubr.f32.mxu1 %v3232_v20  ;;  %2340 = vmatpush3.bf16.msra.mxu0 %v2337_v47 }
 0x116   : > { %2342 = vmatprep.subr.bf16.mxu0 %v2341_v52  ;;  %2368 = vmatpush3.bf16.msra.mxu1 %v2337_v47 }
 0x117   : > { %1166 = vmatmul.mubr.f32.gmra.mrb[40].mxu0 %v3160_v11  ;;  %2361 = vmatprep.subr.bf16.mxu1 %v2341_v52  ;;  %v2353_v11 = vpack.c.bf16 %v783_v61, %v782_v42 }
 0x118   : > { %1311 = vmatmul.mubr.f32.gmra.mrb[40].mxu1 %v3163_v12  ;;  %1170 = vmatprep.mubr.f32.mxu0 %v3200_v35 }
 0x119   : > { %1315 = vmatprep.mubr.f32.mxu1 %v3270_v38  ;;  %2344 = vmatpush3.bf16.msra.mxu0 %v2341_v52 }
 0x11a   : > { %2346 = vmatprep.subr.bf16.mxu0 %v2345_v21  ;;  %2369 = vmatpush3.bf16.msra.mxu1 %v2341_v52 }
 0x11b   : > { %1171 = vmatmul.mubr.f32.gmra.mrb[42].mxu0 %v3197_v34  ;;  %2362 = vmatprep.subr.bf16.mxu1 %v2345_v21 }
 0x11c   : > { %1316 = vmatmul.mubr.f32.gmra.mrb[42].mxu1 %v3166_v13  ;;  %1175 = vmatprep.mubr.f32.mxu0 %v3267_v43 }
 0x11d   : > { %1320 = vmatprep.mubr.f32.mxu1 %v3288_v40  ;;  %2348 = vmatpush3.bf16.msra.mxu0 %v2345_v21 }
 0x11e   : > { %2350 = vmatprep.subr.bf16.mxu0 %v2349_v24  ;;  %2370 = vmatpush3.bf16.msra.mxu1 %v2345_v21 }
 0x11f   : > { %1176 = vmatmul.mubr.f32.gmra.mrb[44].mxu0 %v3232_v20  ;;  %2363 = vmatprep.subr.bf16.mxu1 %v2349_v24 }
 0x120   : > { %1321 = vmatmul.mubr.f32.gmra.mrb[44].mxu1 %v3244_v32  ;;  %1180 = vmatprep.mubr.f32.mxu0 %v3285_v18 }
 0x121   : > { %1325 = vmatprep.mubr.f32.mxu1 %v3306_v4  ;;  %2352 = vmatpush3.bf16.msra.mxu0 %v2349_v24 }
 0x122   : > { %2354 = vmatprep.subr.bf16.mxu0 %v2353_v11  ;;  %2371 = vmatpush3.bf16.msra.mxu1 %v2349_v24 }
 0x123   : > { %1181 = vmatmul.mubr.f32.gmra.mrb[46].mxu0 %v3270_v38  ;;  %2364 = vmatprep.subr.bf16.mxu1 %v2353_v11 }
 0x124   : > { %1326 = vmatmul.mubr.f32.gmra.mrb[46].mxu1 %v3247_v17  ;;  %1185 = vmatprep.mubr.f32.mxu0 %v3303_v39 }
 0x125   : > { %1330 = vmatprep.mubr.f32.mxu1 %v3319_v25  ;;  %2356 = vmatpush3.bf16.msra.mxu0 %v2353_v11 }
 0x126   : > { %2372 = vmatpush3.bf16.msra.mxu1 %v2353_v11 }
 0x127   : > { %1186 = vmatmul.mubr.f32.gmra.mrb[48].mxu0 %v3288_v40 }
 0x128   : > { %1331 = vmatmul.mubr.f32.gmra.mrb[48].mxu1 %v3292_v0  ;;  %1190 = vmatprep.mubr.f32.mxu0 %v3316_v19 }
 0x129   : > { %1335 = vmatprep.mubr.f32.mxu1 %v3333_v41 }
 0x12b   : > { %1191 = vmatmul.mubr.f32.gmra.mrb[50].mxu0 %v3306_v4 }
 0x12c   : > { %1336 = vmatmul.mubr.f32.gmra.mrb[50].mxu1 %v3295_v1  ;;  %1195 = vmatprep.mubr.f32.mxu0 %v3330_v30 }
 0x12d   : > { %1340 = vmatprep.mubr.f32.mxu1 %v3346_v29 }
 0x12f   : > { %1196 = vmatmul.mubr.f32.gmra.mrb[52].mxu0 %v3319_v25 }
 0x130   : > { %1341 = vmatmul.mubr.f32.gmra.mrb[52].mxu1 %v3323_v10  ;;  %1200 = vmatprep.mubr.f32.mxu0 %v3341_v54 }
 0x131   : > { %1345 = vmatprep.mubr.f32.mxu1 %v3175_v16 }
 0x133   : > { %1201 = vmatmul.mubr.f32.gmra.mrb[54].mxu0 %v3333_v41 }
 0x134   : > { %1346 = vmatmul.mubr.f32.gmra.mrb[54].mxu1 %v3105_v36  ;;  %1205 = vmatprep.mubr.f32.mxu0 %v3355_v2 }
 0x135   : > { %1350 = vmatprep.mubr.f32.mxu1 %v3182_v27 }
 0x137   : > { %1206 = vmatmul.mubr.f32.gmra.mrb[56].mxu0 %v3346_v29 }
 0x138   : > { %1351 = vmatmul.mubr.f32.gmra.mrb[56].mxu1 %v3130_v50  ;;  %1210 = vmatprep.mubr.f32.mxu0 %v3363_v56 }
 0x139   : > { %1355 = vmatprep.mubr.f32.mxu1 %v3224_v14 }
 0x13b   : > { %1211 = vmatmul.mubr.f32.gmra.mrb[58].mxu0 %v3175_v16 }
 0x13c   : > { %1356 = vmatmul.mubr.f32.gmra.mrb[58].mxu1 %v3139_v59  ;;  %1215 = vmatprep.mubr.f32.mxu0 %v3190_v33 }
 0x13d   : > { %1360 = vmatprep.mubr.f32.mxu1 %v3235_v23 }
 0x13f   : > { %1216 = vmatmul.mubr.f32.gmra.mrb[60].mxu0 %v3182_v27 }
 0x140   : > { %1361 = vmatmul.mubr.f32.gmra.mrb[60].mxu1 %v3211_v55  ;;  %1220 = vmatprep.mubr.f32.mxu0 %v3227_v15 }
 0x141   : > { %1365 = vmatprep.mubr.f32.mxu1 %v3241_v31 }
 0x143   : > { %1221 = vmatmul.mubr.f32.gmra.mrb[62].mxu0 %v3224_v14 }
 0x144   : > { %1366 = vmatmul.mubr.f32.gmra.mrb[62].mxu1 %v3214_v60  ;;  %2173 = vmatprep.mubr.f32.mxu0 %v3112_v37  ;;  %v3452_v37 = vld [vmem:[%s3723_s2] ss:$0 sm:$0xff] }
 0x145   : > { %2185 = vmatprep.mubr.f32.mxu1 %v3330_v30 }
 0x147   : > { %2174 = vmatmul.mubr.f32.vlgmr.msra.gmra.mrb[64].mxu0 %v3151_v5 }
 0x148   : > { %2186 = vmatmul.mubr.f32.vlgmr.msra.gmra.mrb[64].mxu1 %v3341_v54  ;;  %2176 = vmatprep.mubr.f32.mxu0 %v3186_v28 }
 0x149   : > { %2188 = vmatprep.mubr.f32.mxu1 %v3355_v2 }
 0x14b   : > { %2177 = vmatmul.mubr.f32.gmra.mrb[66].mxu0 %v3200_v35 }
 0x14c   : > { %2189 = vmatmul.mubr.f32.gmra.mrb[66].mxu1 %v3363_v56  ;;  %2179 = vmatprep.mubr.f32.mxu0 %v3267_v43 }
 0x14d   : > { %2191 = vmatprep.mubr.f32.mxu1 %v3190_v33 }
 0x14f   : > { %2180 = vmatmul.mubr.f32.gmra.mrb[68].mxu0 %v3285_v18 }
 0x150   : > { %2192 = vmatmul.mubr.f32.gmra.mrb[68].mxu1 %v3227_v15  ;;  %2182 = vmatprep.mubr.f32.mxu0 %v3303_v39 }
 0x151   : > { %2194 = vmatprep.mubr.f32.mxu1 %v3252_v46 }
 0x153   : > { %2183 = vmatmul.mubr.f32.gmra.mrb[70].mxu0 %v3316_v19 }
 0x154   : > { %2195 = vmatmul.mubr.f32.gmra.mrb[70].mxu1 %v3255_v49 }
 0x19a   : > { %v1821_v36 = vpop.f32.mrb[0].mxu0 }
 0x19b   : > { %v1822_v50 = vpop.f32.mrb[1].mxu0  ;;  %v1901_v59 = vpop.f32.mrb[0].mxu1 }
 0x19c   : > { %v1823_v5 = vadd.f32 %v1822_v50, %v1821_v36  ;;  %v1902_v12 = vpop.f32.mrb[1].mxu1 }
 0x19d   : > { %v1903_v13 = vadd.f32 %v1902_v12, %v1901_v59 }
 0x19e   : > { %v858_v16 = vadd.f32 %v1823_v5, %v3452_v37  ;;  %v1824_v27 = vpop.f32.mrb[2].mxu0 }
 0x19f   : > { %v1825_v28 = vpop.f32.mrb[3].mxu0  ;;  %v1904_v33 = vpop.f32.mrb[2].mxu1 }
 0x1a0   : > { %v3455_v34 = vadd.f32 %v1903_v13, %v858_v16  ;;  %v1826_v35 = vadd.f32 %v1825_v28, %v1824_v27  ;;  %v1905_v55 = vpop.f32.mrb[3].mxu1 }
 0x1a1   : > { %v1906_v60 = vadd.f32 %v1905_v55, %v1904_v33 }
 0x1a2   : > { %v863_v14 = vadd.f32 %v1826_v35, %v3452_v37  ;;  %v1827_v15 = vpop.f32.mrb[4].mxu0 }
 0x1a3   : > { %v1828_v20 = vpop.f32.mrb[5].mxu0  ;;  %v1907_v23 = vpop.f32.mrb[4].mxu1 }
 0x1a4   : > { %v3458_v31 = vadd.f32 %v1906_v60, %v863_v14  ;;  %v1829_v32 = vadd.f32 %v1828_v20, %v1827_v15  ;;  %v1908_v17 = vpop.f32.mrb[5].mxu1 }
 0x1a5   : > { %v1909_v46 = vadd.f32 %v1908_v17, %v1907_v23 }
 0x1a6   : > { %v868_v49 = vadd.f32 %v1829_v32, %v3452_v37  ;;  %v1830_v43 = vpop.f32.mrb[6].mxu0 }
 0x1a7   : > { %v1831_v38 = vpop.f32.mrb[7].mxu0  ;;  %v1910_v18 = vpop.f32.mrb[6].mxu1 }
 0x1a8   : > { %v3461_v40 = vadd.f32 %v1909_v46, %v868_v49  ;;  %v1832_v0 = vadd.f32 %v1831_v38, %v1830_v43  ;;  %v1911_v1 = vpop.f32.mrb[7].mxu1 }
 0x1a9   : > { %v1912_v39 = vadd.f32 %v1911_v1, %v1910_v18 }
 0x1aa   : > { %v873_v4 = vadd.f32 %v1832_v0, %v3452_v37  ;;  %v1833_v19 = vpop.f32.mrb[8].mxu0 }
 0x1ab   : > { %v1834_v25 = vpop.f32.mrb[9].mxu0  ;;  %v1913_v10 = vpop.f32.mrb[8].mxu1 }
 0x1ac   : > { %v3464_v30 = vadd.f32 %v1912_v39, %v873_v4  ;;  %v1835_v41 = vadd.f32 %v1834_v25, %v1833_v19  ;;  %v1914_v54 = vpop.f32.mrb[9].mxu1 }
 0x1ad   : > { %v1915_v29 = vadd.f32 %v1914_v54, %v1913_v10 }
 0x1ae   : > { %v878_v62 = vadd.f32 %v1835_v41, %v3452_v37  ;;  %v1836_v2 = vpop.f32.mrb[10].mxu0 }
 0x1af   : > { %v1837_v6 = vpop.f32.mrb[11].mxu0  ;;  %v1916_v56 = vpop.f32.mrb[10].mxu1 }
 0x1b0   : > { %v3467_v7 = vadd.f32 %v1915_v29, %v878_v62  ;;  %v1838_v8 = vadd.f32 %v1837_v6, %v1836_v2  ;;  %v1917_v58 = vpop.f32.mrb[11].mxu1 }
 0x1b1   : > { %v1918_v9 = vadd.f32 %v1917_v58, %v1916_v56 }
 0x1b2   : > { %v883_v26 = vadd.f32 %v1838_v8, %v3452_v37  ;;  %v1839_v3 = vpop.f32.mrb[12].mxu0 }
 0x1b3   : > { %v1840_v63 = vpop.f32.mrb[13].mxu0  ;;  %v1919_v44 = vpop.f32.mrb[12].mxu1 }
 0x1b4   : > { %v3470_v47 = vadd.f32 %v1918_v9, %v883_v26  ;;  %v1841_v48 = vadd.f32 %v1840_v63, %v1839_v3  ;;  %v1920_v57 = vpop.f32.mrb[13].mxu1 }
 0x1b5   : > { %v1921_v52 = vadd.f32 %v1920_v57, %v1919_v44 }
 0x1b6   : > { %v888_v51 = vadd.f32 %v1841_v48, %v3452_v37  ;;  %v1842_v45 = vpop.f32.mrb[14].mxu0 }
 0x1b7   : > { %v1843_v21 = vpop.f32.mrb[15].mxu0  ;;  %v1922_v22 = vpop.f32.mrb[14].mxu1 }
 0x1b8   : > { %v3473_v53 = vadd.f32 %v1921_v52, %v888_v51  ;;  %v1844_v24 = vadd.f32 %v1843_v21, %v1842_v45  ;;  %v1923_v42 = vpop.f32.mrb[15].mxu1 }
 0x1b9   : > { %v1924_v61 = vadd.f32 %v1923_v42, %v1922_v22 }
 0x1ba   : > { %v893_v11 = vadd.f32 %v1844_v24, %v3452_v37  ;;  %v1845_v36 = vpop.f32.mrb[16].mxu0 }
 0x1bb   : > { %v1846_v50 = vpop.f32.mrb[17].mxu0  ;;  %v1925_v59 = vpop.f32.mrb[16].mxu1 }
 0x1bc   : > { %v3476_v5 = vadd.f32 %v1924_v61, %v893_v11  ;;  %v1847_v12 = vadd.f32 %v1846_v50, %v1845_v36  ;;  %v1926_v13 = vpop.f32.mrb[17].mxu1 }
 0x1bd   : > { %v1927_v16 = vadd.f32 %v1926_v13, %v1925_v59 }
 0x1be   : > { %v898_v27 = vadd.f32 %v1847_v12, %v3452_v37  ;;  %v1848_v28 = vpop.f32.mrb[18].mxu0 }
 0x1bf   : > { %v1849_v33 = vpop.f32.mrb[19].mxu0  ;;  %v1928_v35 = vpop.f32.mrb[18].mxu1 }
 0x1c0   : > { %v3479_v55 = vadd.f32 %v1927_v16, %v898_v27  ;;  %v1850_v60 = vadd.f32 %v1849_v33, %v1848_v28  ;;  %v1929_v14 = vpop.f32.mrb[19].mxu1 }
 0x1c1   : > { %v1930_v15 = vadd.f32 %v1929_v14, %v1928_v35 }
 0x1c2   : > { %v903_v20 = vadd.f32 %v1850_v60, %v3452_v37  ;;  %v1851_v23 = vpop.f32.mrb[20].mxu0 }
 0x1c3   : > { %v1852_v32 = vpop.f32.mrb[21].mxu0  ;;  %v1931_v17 = vpop.f32.mrb[20].mxu1 }
 0x1c4   : > { %v3482_v46 = vadd.f32 %v1930_v15, %v903_v20  ;;  %v1853_v49 = vadd.f32 %v1852_v32, %v1851_v23  ;;  %v1932_v43 = vpop.f32.mrb[21].mxu1 }
 0x1c5   : > { %v1933_v38 = vadd.f32 %v1932_v43, %v1931_v17 }
 0x1c6   : > { %v908_v18 = vadd.f32 %v1853_v49, %v3452_v37  ;;  %v1854_v0 = vpop.f32.mrb[22].mxu0 }
 0x1c7   : > { %v1855_v1 = vpop.f32.mrb[23].mxu0  ;;  %v1934_v39 = vpop.f32.mrb[22].mxu1 }
 0x1c8   : > { %v3485_v4 = vadd.f32 %v1933_v38, %v908_v18  ;;  %v1856_v19 = vadd.f32 %v1855_v1, %v1854_v0  ;;  %v1935_v25 = vpop.f32.mrb[23].mxu1 }
 0x1c9   : > { %v1936_v10 = vadd.f32 %v1935_v25, %v1934_v39 }
 0x1ca   : > { %v913_v41 = vadd.f32 %v1856_v19, %v3452_v37  ;;  %v1857_v54 = vpop.f32.mrb[24].mxu0 }
 0x1cb   : > { %v1858_v29 = vpop.f32.mrb[25].mxu0  ;;  %v1937_v62 = vpop.f32.mrb[24].mxu1 }
 0x1cc   : > { %v3488_v2 = vadd.f32 %v1936_v10, %v913_v41  ;;  %v1859_v6 = vadd.f32 %v1858_v29, %v1857_v54  ;;  %v1938_v56 = vpop.f32.mrb[25].mxu1 }
 0x1cd   : > { %v1939_v8 = vadd.f32 %v1938_v56, %v1937_v62 }
 0x1ce   : > { %v918_v58 = vadd.f32 %v1859_v6, %v3452_v37  ;;  %v1860_v9 = vpop.f32.mrb[26].mxu0 }
 0x1cf   : > { %v1861_v26 = vpop.f32.mrb[27].mxu0  ;;  %v1940_v3 = vpop.f32.mrb[26].mxu1 }
 0x1d0   : > { %v3491_v63 = vadd.f32 %v1939_v8, %v918_v58  ;;  %v1862_v44 = vadd.f32 %v1861_v26, %v1860_v9  ;;  %v1941_v48 = vpop.f32.mrb[27].mxu1 }
 0x1d1   : > { %v1942_v57 = vadd.f32 %v1941_v48, %v1940_v3 }
 0x1d2   : > { %v923_v52 = vadd.f32 %v1862_v44, %v3452_v37  ;;  %v1863_v51 = vpop.f32.mrb[28].mxu0 }
 0x1d3   : > { %v1864_v45 = vpop.f32.mrb[29].mxu0  ;;  %v1943_v21 = vpop.f32.mrb[28].mxu1 }
 0x1d4   : > { %v3494_v22 = vadd.f32 %v1942_v57, %v923_v52  ;;  %v1865_v24 = vadd.f32 %v1864_v45, %v1863_v51  ;;  %v1944_v42 = vpop.f32.mrb[29].mxu1 }
 0x1d5   : > { %v1945_v61 = vadd.f32 %v1944_v42, %v1943_v21 }
 0x1d6   : > { %v928_v11 = vadd.f32 %v1865_v24, %v3452_v37  ;;  %v1866_v36 = vpop.f32.mrb[30].mxu0 }
 0x1d7   : > { %v1867_v50 = vpop.f32.mrb[31].mxu0  ;;  %v1946_v59 = vpop.f32.mrb[30].mxu1 }
 0x1d8   : > { %v3497_v12 = vadd.f32 %v1945_v61, %v928_v11  ;;  %v1868_v13 = vadd.f32 %v1867_v50, %v1866_v36  ;;  %v1947_v16 = vpop.f32.mrb[31].mxu1 }
 0x1d9   : > { %v1948_v27 = vadd.f32 %v1947_v16, %v1946_v59 }
 0x1da   : > { %v933_v28 = vadd.f32 %v1868_v13, %v3452_v37  ;;  %v1981_v33 = vpop.f32.mrb[32].mxu0 }
 0x1db   : > { %v1982_v35 = vpop.f32.mrb[33].mxu0  ;;  %v2061_v60 = vpop.f32.mrb[32].mxu1 }
 0x1dc   : > { %v3500_v14 = vadd.f32 %v1948_v27, %v933_v28  ;;  %v1983_v15 = vadd.f32 %v1982_v35, %v1981_v33  ;;  %v2062_v20 = vpop.f32.mrb[33].mxu1 }
 0x1dd   : > { %v2063_v23 = vadd.f32 %v2062_v20, %v2061_v60 }
 0x1de   : > { %v1148_v32 = vadd.f32 %v1983_v15, %v3455_v34  ;;  %v1984_v17 = vpop.f32.mrb[34].mxu0 }
 0x1df   : > { %v1985_v49 = vpop.f32.mrb[35].mxu0  ;;  %v2064_v43 = vpop.f32.mrb[34].mxu1 }
 0x1e0   : > { %v1986_v38 = vadd.f32 %v1985_v49, %v1984_v17  ;;  %v2065_v18 = vpop.f32.mrb[35].mxu1  ;;  %v3503_v0 = vadd.f32 %v2063_v23, %v1148_v32 }
 0x1e1   : > { %v2066_v1 = vadd.f32 %v2065_v18, %v2064_v43 }
 0x1e2   : > { %v1153_v37 = vadd.f32 %v1986_v38, %v3458_v31  ;;  %v1987_v39 = vpop.f32.mrb[36].mxu0 }
 0x1e3   : > { %v1988_v19 = vpop.f32.mrb[37].mxu0  ;;  %v2067_v25 = vpop.f32.mrb[36].mxu1 }
 0x1e4   : > { %v1989_v10 = vadd.f32 %v1988_v19, %v1987_v39  ;;  %v2068_v41 = vpop.f32.mrb[37].mxu1  ;;  %v3506_v54 = vadd.f32 %v2066_v1, %v1153_v37 }
 0x1e5   : > { %v2069_v29 = vadd.f32 %v2068_v41, %v2067_v25 }
 0x1e6   : > { %v1158_v34 = vadd.f32 %v1989_v10, %v3461_v40  ;;  %v1990_v62 = vpop.f32.mrb[38].mxu0 }
 0x1e7   : > { %v1991_v6 = vpop.f32.mrb[39].mxu0  ;;  %v2070_v56 = vpop.f32.mrb[38].mxu1 }
 0x1e8   : > { %v1992_v8 = vadd.f32 %v1991_v6, %v1990_v62  ;;  %v2071_v58 = vpop.f32.mrb[39].mxu1  ;;  %v3509_v9 = vadd.f32 %v2069_v29, %v1158_v34 }
 0x1e9   : > { %v2072_v26 = vadd.f32 %v2071_v58, %v2070_v56 }
 0x1ea   : > { %v1163_v31 = vadd.f32 %v1992_v8, %v3464_v30  ;;  %v1993_v3 = vpop.f32.mrb[40].mxu0 }
 0x1eb   : > { %v1994_v44 = vpop.f32.mrb[41].mxu0  ;;  %v2073_v48 = vpop.f32.mrb[40].mxu1 }
 0x1ec   : > { %v1995_v57 = vadd.f32 %v1994_v44, %v1993_v3  ;;  %v2074_v52 = vpop.f32.mrb[41].mxu1  ;;  %v3512_v51 = vadd.f32 %v2072_v26, %v1163_v31 }
 0x1ed   : > { %v2075_v45 = vadd.f32 %v2074_v52, %v2073_v48 }
 0x1ee   : > { %v1168_v40 = vadd.f32 %v1995_v57, %v3467_v7  ;;  %v1996_v21 = vpop.f32.mrb[42].mxu0 }
 0x1ef   : > { %v1997_v24 = vpop.f32.mrb[43].mxu0  ;;  %v2076_v42 = vpop.f32.mrb[42].mxu1 }
 0x1f0   : > { %v1998_v61 = vadd.f32 %v1997_v24, %v1996_v21  ;;  %v2077_v11 = vpop.f32.mrb[43].mxu1  ;;  %v3515_v36 = vadd.f32 %v2075_v45, %v1168_v40 }
 0x1f1   : > { %v2078_v50 = vadd.f32 %v2077_v11, %v2076_v42 }
 0x1f2   : > { %v1173_v30 = vadd.f32 %v1998_v61, %v3470_v47  ;;  %v1999_v59 = vpop.f32.mrb[44].mxu0 }
 0x1f3   : > { %v2000_v13 = vpop.f32.mrb[45].mxu0  ;;  %v2079_v16 = vpop.f32.mrb[44].mxu1 }
 0x1f4   : > { %v2001_v27 = vadd.f32 %v2000_v13, %v1999_v59  ;;  %v2080_v28 = vpop.f32.mrb[45].mxu1  ;;  %v3518_v33 = vadd.f32 %v2078_v50, %v1173_v30 }
 0x1f5   : > { %v2081_v35 = vadd.f32 %v2080_v28, %v2079_v16 }
 0x1f6   : > { %v1178_v7 = vadd.f32 %v2001_v27, %v3473_v53  ;;  %v2002_v60 = vpop.f32.mrb[46].mxu0 }
 0x1f7   : > { %v2003_v15 = vpop.f32.mrb[47].mxu0  ;;  %v2082_v20 = vpop.f32.mrb[46].mxu1 }
 0x1f8   : > { %v2004_v23 = vadd.f32 %v2003_v15, %v2002_v60  ;;  %v2083_v32 = vpop.f32.mrb[47].mxu1  ;;  %v3521_v17 = vadd.f32 %v2081_v35, %v1178_v7 }
 0x1f9   : > { %v2084_v49 = vadd.f32 %v2083_v32, %v2082_v20 }
 0x1fa   : > { %v1183_v47 = vadd.f32 %v2004_v23, %v3476_v5  ;;  %v2005_v43 = vpop.f32.mrb[48].mxu0 }
 0x1fb   : > { %v2006_v38 = vpop.f32.mrb[49].mxu0  ;;  %v2085_v18 = vpop.f32.mrb[48].mxu1 }
 0x1fc   : > { %v2007_v1 = vadd.f32 %v2006_v38, %v2005_v43  ;;  %v2086_v37 = vpop.f32.mrb[49].mxu1  ;;  %v3524_v39 = vadd.f32 %v2084_v49, %v1183_v47 }
 0x1fd   : > { %v2087_v19 = vadd.f32 %v2086_v37, %v2085_v18 }
 0x1fe   : > { %v1188_v53 = vadd.f32 %v2007_v1, %v3479_v55  ;;  %v2008_v25 = vpop.f32.mrb[50].mxu0 }
 0x1ff   : > { %v2009_v10 = vpop.f32.mrb[51].mxu0  ;;  %v2088_v41 = vpop.f32.mrb[50].mxu1 }
 0x200   : > { %v2010_v29 = vadd.f32 %v2009_v10, %v2008_v25  ;;  %v2089_v34 = vpop.f32.mrb[51].mxu1  ;;  %v1333_v62 = vadd.f32 %v2087_v19, %v1188_v53 }
 0x201   : > { %v2090_v6 = vadd.f32 %v2089_v34, %v2088_v41 }
 0x202   : > { %v1193_v56 = vadd.f32 %v2010_v29, %v3482_v46  ;;  %v2011_v5 = vpop.f32.mrb[52].mxu0 }
 0x203   : > { %v2012_v8 = vpop.f32.mrb[53].mxu0  ;;  %v2091_v58 = vpop.f32.mrb[52].mxu1 }
 0x204   : > { %v2013_v26 = vadd.f32 %v2012_v8, %v2011_v5  ;;  %v2092_v31 = vpop.f32.mrb[53].mxu1  ;;  %v1338_v3 = vadd.f32 %v2090_v6, %v1193_v56 }
 0x205   : > { %v2093_v44 = vadd.f32 %v2092_v31, %v2091_v58 }
 0x206   : > { %v1198_v48 = vadd.f32 %v2013_v26, %v3485_v4  ;;  %v2014_v57 = vpop.f32.mrb[54].mxu0 }
 0x207   : > { %v2015_v55 = vpop.f32.mrb[55].mxu0  ;;  %v2094_v52 = vpop.f32.mrb[54].mxu1 }
 0x208   : > { %v2016_v45 = vadd.f32 %v2015_v55, %v2014_v57  ;;  %v2095_v40 = vpop.f32.mrb[55].mxu1  ;;  %v1343_v21 = vadd.f32 %v2093_v44, %v1198_v48 }
 0x209   : > { %v2096_v24 = vadd.f32 %v2095_v40, %v2094_v52 }
 0x20a   : > { %v1203_v42 = vadd.f32 %v2016_v45, %v3488_v2  ;;  %v2017_v61 = vpop.f32.mrb[56].mxu0 }
 0x20b   : > { %v2018_v46 = vpop.f32.mrb[57].mxu0  ;;  %v2097_v11 = vpop.f32.mrb[56].mxu1 }
 0x20c   : > { %v2019_v50 = vadd.f32 %v2018_v46, %v2017_v61  ;;  %v2098_v30 = vpop.f32.mrb[57].mxu1  ;;  %v1348_v59 = vadd.f32 %v2096_v24, %v1203_v42 }
 0x20d   : > { %v2099_v13 = vadd.f32 %v2098_v30, %v2097_v11 }
 0x20e   : > { %v1208_v16 = vadd.f32 %v2019_v50, %v3491_v63  ;;  %v2020_v27 = vpop.f32.mrb[58].mxu0 }
 0x20f   : > { %v2021_v4 = vpop.f32.mrb[59].mxu0  ;;  %v2100_v28 = vpop.f32.mrb[58].mxu1 }
 0x210   : > { %v2022_v35 = vadd.f32 %v2021_v4, %v2020_v27  ;;  %v2101_v7 = vpop.f32.mrb[59].mxu1  ;;  %v3531_v60 = vadd.f32 %v2099_v13, %v1208_v16 }
 0x211   : > { %v2102_v15 = vadd.f32 %v2101_v7, %v2100_v28 }
 0x212   : > { %v1213_v20 = vadd.f32 %v2022_v35, %v3494_v22  ;;  %v2023_v2 = vpop.f32.mrb[60].mxu0 }
 0x213   : > { %v2024_v23 = vpop.f32.mrb[61].mxu0  ;;  %v2103_v32 = vpop.f32.mrb[60].mxu1 }
 0x214   : > { %v2025_v49 = vadd.f32 %v2024_v23, %v2023_v2  ;;  %v2104_v47 = vpop.f32.mrb[61].mxu1  ;;  %v1358_v43 = vadd.f32 %v2102_v15, %v1213_v20 }
 0x215   : > { %v2105_v38 = vadd.f32 %v2104_v47, %v2103_v32 }
 0x216   : > { %v1218_v18 = vadd.f32 %v2025_v49, %v3497_v12  ;;  %v2026_v63 = vpop.f32.mrb[62].mxu0 }
 0x217   : > { %v2027_v1 = vpop.f32.mrb[63].mxu0  ;;  %v2106_v37 = vpop.f32.mrb[62].mxu1 }
 0x218   : > { %v2028_v19 = vadd.f32 %v2027_v1, %v2026_v63  ;;  %v2107_v53 = vpop.f32.mrb[63].mxu1  ;;  %v3535_v25 = vadd.f32 %v2105_v38, %v1218_v18 }
 0x219   : > { %v2108_v10 = vadd.f32 %v2107_v53, %v2106_v37 }
 0x21a   : > { %v1223_v22 = vadd.f32 %v2028_v19, %v3500_v14  ;;  %v2175_v41 = vpop.f32.mrb[64].mxu0 }
 0x21b   : > { %v1443_v29 = vadd.f32 %v2175_v41, %v3506_v54  ;;  %v2187_v34 = vpop.f32.mrb[64].mxu1  ;;  %v1437_v6 = vpop.f32.mrb[65].mxu0 }
 0x21c   : > { %v3539_v12 = vadd.f32 %v2187_v34, %v1338_v3  ;;  %v1438_v56 = vadd.f32 %v1437_v6, %v3503_v0  ;;  %v1477_v5 = vpop.f32.mrb[65].mxu1  ;;  %v1368_v8 = vadd.f32 %v2108_v10, %v1223_v22 }
 0x21d   : > { %v1538_v58 = vmul.f32 %v1443_v29, %v1443_v29  ;;  %1580 = vst [vmem:[%s2986_s9 + $0x8] sm:$0xff] %v1443_v29  ;;  %v3543_v26 = vadd.f32 %v1477_v5, %v1333_v62 }
 0x21e   : > { %1588 = vst [vmem:[%s2986_s9 + $0x48] sm:$0xff] %v3539_v12  ;;  %v1516_v14 = vadd.f32 %v1443_v29, %v1438_v56  ;;  %v1537_v54 = vmul.f32 %v1438_v56, %v1438_v56  ;;  %1579 = vst [vmem:[%s2986_s9] sm:$0xff] %v1438_v56  ;;  %v2178_v31 = vpop.f32.mrb[66].mxu0 }
 0x21f   : > { %1587 = vst [vmem:[%s2986_s9 + $0x40] sm:$0xff] %v3543_v26  ;;  %v1453_v0 = vadd.f32 %v2178_v31, %v3512_v51  ;;  %v2190_v3 = vpop.f32.mrb[66].mxu1  ;;  %v1447_v44 = vpop.f32.mrb[67].mxu0 }
 0x220   : > { %v1553_v48 = vadd.f32 %v1538_v58, %v1537_v54  ;;  %v3551_v57 = vadd.f32 %v2190_v3, %v1348_v59  ;;  %v1448_v62 = vadd.f32 %v1447_v44, %v3509_v9  ;;  %v1487_v55 = vpop.f32.mrb[67].mxu1 }
 0x221   : > { %1582 = vst [vmem:[%s2986_s9 + $0x18] sm:$0xff] %v1453_v0  ;;  %v3557_v52 = vadd.f32 %v1487_v55, %v1343_v21  ;;  %v1540_v24 = vmul.f32 %v1453_v0, %v1453_v0 }
 0x222   : > { %1590 = vst [vmem:[%s2986_s9 + $0x58] sm:$0xff] %v3551_v57  ;;  %v1517_v45 = vadd.f32 %v1516_v14, %v1448_v62  ;;  %v1539_v51 = vmul.f32 %v1448_v62, %v1448_v62  ;;  %1581 = vst [vmem:[%s2986_s9 + $0x10] sm:$0xff] %v1448_v62  ;;  %v2181_v40 = vpop.f32.mrb[68].mxu0 }
 0x223   : > { %1589 = vst [vmem:[%s2986_s9 + $0x50] sm:$0xff] %v3557_v52  ;;  %v1463_v9 = vadd.f32 %v2181_v40, %v3518_v33  ;;  %v2193_v42 = vpop.f32.mrb[68].mxu1  ;;  %v1457_v61 = vpop.f32.mrb[69].mxu0 }
 0x224   : > { %v1554_v21 = vadd.f32 %v1553_v48, %v1539_v51  ;;  %v3569_v46 = vadd.f32 %v2193_v42, %v1358_v43  ;;  %v1458_v11 = vadd.f32 %v1457_v61, %v3515_v36  ;;  %v1518_v50 = vadd.f32 %v1517_v45, %v1453_v0  ;;  %v1497_v30 = vpop.f32.mrb[69].mxu1 }
 0x225   : > { %1584 = vst [vmem:[%s2986_s9 + $0x28] sm:$0xff] %v1463_v9  ;;  %v3574_v59 = vadd.f32 %v1497_v30, %v3531_v60  ;;  %v1542_v4 = vmul.f32 %v1463_v9, %v1463_v9 }
 0x226   : > { %1592 = vst [vmem:[%s2986_s9 + $0x68] sm:$0xff] %v3569_v46  ;;  %v1519_v33 = vadd.f32 %v1518_v50, %v1458_v11  ;;  %v1541_v13 = vmul.f32 %v1458_v11, %v1458_v11  ;;  %v1555_v16 = vadd.f32 %v1554_v21, %v1540_v24  ;;  %1583 = vst [vmem:[%s2986_s9 + $0x20] sm:$0xff] %v1458_v11  ;;  %v2184_v27 = vpop.f32.mrb[70].mxu0 }
 0x227   : > { %1591 = vst [vmem:[%s2986_s9 + $0x60] sm:$0xff] %v3574_v59  ;;  %v1473_v36 = vadd.f32 %v2184_v27, %v3524_v39  ;;  %v2196_v28 = vpop.f32.mrb[70].mxu1  ;;  %v1467_v35 = vpop.f32.mrb[71].mxu0 }
 0x228   : > { %v1556_v7 = vadd.f32 %v1555_v16, %v1541_v13  ;;  %v3584_v60 = vadd.f32 %v2196_v28, %v1368_v8  ;;  %v1468_v15 = vadd.f32 %v1467_v35, %v3521_v17  ;;  %v1520_v20 = vadd.f32 %v1519_v33, %v1463_v9  ;;  %v1507_v2 = vpop.f32.mrb[71].mxu1 }
 0x229   : > { %1586 = vst [vmem:[%s2986_s9 + $0x38] sm:$0xff] %v1473_v36  ;;  %v1508_v39 = vadd.f32 %v1507_v2, %v3535_v25  ;;  %v1544_v49 = vmul.f32 %v1473_v36, %v1473_v36 }
 0x22a   : > { %1594 = vst [vmem:[%s2986_s9 + $0x78] sm:$0xff] %v3584_v60  ;;  %v1521_v23 = vadd.f32 %v1520_v20, %v1468_v15  ;;  %v1543_v17 = vmul.f32 %v1468_v15, %v1468_v15  ;;  %v1557_v32 = vadd.f32 %v1556_v7, %v1542_v4  ;;  %1585 = vst [vmem:[%s2986_s9 + $0x30] sm:$0xff] %v1468_v15 }
 0x22b   : > { %1593 = vst [vmem:[%s2986_s9 + $0x70] sm:$0xff] %v1508_v39 }
 0x22c   : > { %v1522_v47 = vadd.f32 %v1521_v23, %v1473_v36  ;;  %v1558_v43 = vadd.f32 %v1557_v32, %v1543_v17 }
 0x22d   : > { %2567 = shalt.err (!%p2564_p4)
}
 0x22e   : > { %s2568_s6 = scalar_lea.hbm %s3594_s17, 2048  ;;  %s2572_s19 = scalar_lea.hbm %s3726_s5, 8192 }
 0x22f   : > { %p2569_p7 = scmp.ne.s32.totalorder %s3594_s17, %s2568_s6  ;;  %p2573_p6 = scmp.lt.u32.totalorder %s3594_s17, %s3726_s5 }
 0x230   : > { %p2574_p9 = scmp.lt.u32.totalorder %s2572_s19, %s2568_s6  ;;  %p2576_p0 = scmp.lt.u32.totalorder %s2568_s6, %s3594_s17 }
 0x231   : > { %p2570_p11 = pnand %p2569_p7, %p3775_p2 }
 0x232   : > { %p2575_p10 = por %p2574_p9, %p2573_p6 }
 0x233   : > { %p2571_p1 = pneg %p2570_p11 }
 0x234   : > { %p2577_p5 = por %p2576_p0, %p2575_p10 }
 0x236   : > { %p2578_p8 = pnand %p2577_p5, %p2571_p1 }
 0x238   : > { %2581 = shalt.err (!%p2578_p8)
}
 0x239   : > { %s2720_s7 = smov 128   ;;  %s2721_s18 = smov 8   ;;  %v1545_v38 = vmul.f32 %v3543_v26, %v3543_v26  ;;  %v1523_v18 = vadd.f32 %v1522_v47, %v3543_v26  ;;  %v1559_v63 = vadd.f32 %v1558_v43, %v1544_v49  ;;  %v1546_v1 = vmul.f32 %v3539_v12, %v3539_v12  ;;  %v1574_v61 = vld [vmem:[%s2988_s14] sm:$0x3] }
 0x23a   : > { %2379 = dma.vmem_to_hbm [thread:$0]  (%p3775_p2), %s3587_s1, 2048, %s3594_s17, %s3602_s15, %s2720_s7, %s2720_s7, %s2721_s18   ;;  %v1547_v53 = vmul.f32 %v3557_v52, %v3557_v52  ;;  %v1548_v22 = vmul.f32 %v3551_v57, %v3551_v57  ;;  %v1549_v34 = vmul.f32 %v3574_v59, %v3574_v59  ;;  %v1551_v26 = vmul.f32 %v1508_v39, %v1508_v39 }
 0x23b   : > { %v1524_v37 = vadd.f32 %v1523_v18, %v3539_v12  ;;  %v1560_v19 = vadd.f32 %v1559_v63, %v1545_v38  ;;  %v1550_v12 = vmul.f32 %v3569_v46, %v3569_v46  ;;  %v1552_v54 = vmul.f32 %v3584_v60, %v3584_v60  ;;  %s1633_s1 = sshll.u32 %s2988_s14, 4  ;;  %s3777_s30 = sld [smem:[#allocation24_spill]]  ;;  %s3656_s1 = int_to_ptr.vmem [resolvable:$true] %s1633_s1 }
 0x23c   : > { %vm1575_vm2 = vcmask 1040384   ;;  %s1601_s10 = scalar_lea.sflag [#allocation10], %s2968_s13  ;;  %s2582_s16 = scalar_lea.vmem %s3656_s1, 32 }
 0x23d   : > { %v1561_v25 = vadd.f32 %v1560_v19, %v1546_v1  ;;  %v1525_v10 = vadd.f32 %v1524_v37, %v3557_v52  ;;  %p2583_p2 = scmp.ne.s32.totalorder %s3656_s1, %s2582_s16  ;;  %s2722_s6 = smov [#allocation9]  }
 0x23e   : > { %s2586_s9 = sshll.u32 %s2722_s6, 4  ;;  %s2587_s9 = int_to_ptr.vmem [resolvable:$false] %s2586_s9 }
 0x23f   : > { %v1526_v41 = vadd.f32 %v1525_v10, %v3551_v57  ;;  %v1562_v29 = vadd.f32 %v1561_v25, %v1547_v53  ;;  %p2584_p13 = pnand %p2583_p2, %p2900_p12  ;;  %s2588_s26 = scalar_lea.vmem %s2587_s9, 64 }
 0x240   : > { %p2589_p4 = scmp.lt.s32.totalorder %s3656_s1, %s2587_s9  ;;  %p2590_p7 = scmp.lt.s32.totalorder %s2588_s26, %s2582_s16 }
 0x241   : > { %v1527_v6 = vadd.f32 %v1526_v41, %v3574_v59  ;;  %v1563_v56 = vadd.f32 %v1562_v29, %v1548_v22  ;;  %s3654_s8 = scalar_lea.hbm %s3777_s30, %s1782_s11  ;;  %p2585_p3 = pneg %p2584_p13 }
 0x242   : > { %p2591_p11 = por %p2590_p7, %p2589_p4 }
 0x243   : > { %v1528_v5 = vadd.f32 %v1527_v6, %v3569_v46  ;;  %v1564_v8 = vadd.f32 %v1563_v56, %v1549_v34 }
 0x244   : > { %p2592_p1 = pnand %p2591_p11, %p2585_p3 }
 0x245   : > { %v1529_v58 = vadd.f32 %v1528_v5, %v1508_v39  ;;  %v1565_v14 = vadd.f32 %v1564_v8, %v1550_v12 }
 0x247   : > { %v1530_v31 = vadd.f32 %v1529_v58, %v3584_v60  ;;  %v1566_v0 = vadd.f32 %v1565_v14, %v1551_v26 }
 0x249   : > { %v1531_v3 = vrot.slane %v1530_v31, 4  ;;  %v1567_v44 = vadd.f32 %v1566_v0, %v1552_v54 }
 0x24b   : > { %v1532_v48 = vadd.f32 %v1531_v3, %v1530_v31  ;;  %v1568_v57 = vrot.slane %v1567_v44, 4 }
 0x24d   : > { %v1533_v62 = vrot.slane %v1532_v48, 2  ;;  %v1569_v55 = vadd.f32 %v1568_v57, %v1567_v44 }
 0x24f   : > { %v1534_v52 = vadd.f32 %v1533_v62, %v1532_v48  ;;  %v1570_v45 = vrot.slane %v1569_v55, 2 }
 0x251   : > { %v1535_v51 = vrot.slane %v1534_v52, 1  ;;  %v1571_v40 = vadd.f32 %v1570_v45, %v1569_v55 }
 0x253   : > { %v1572_v24 = vrot.slane %v1571_v40, 1  ;;  %v1536_v9 = vadd.f32 %v1535_v51, %v1534_v52 }
 0x255   : > { %v1573_v42 = vadd.f32 %v1572_v24, %v1571_v40 }
 0x257   : > { %v1576_v21 = vsel %vm1575_vm2, %v1536_v9, %v1573_v42 }
 0x258   : > { %v1577_v46 = vadd.f32 %v1576_v21, %v1574_v61 }
 0x25a   : > { %1578 = vst [vmem:[%s2988_s14] sm:$0x3] %v1577_v46 }
 0x25b   : > { %2595 = shalt.err (!%p2592_p1)
}
 0x25c   : > { %s2596_s13 = scalar_lea.hbm %s3654_s8, 32  ;;  %s2600_s4 = scalar_lea.hbm %s3777_s30, 64 }
 0x25d   : > { %p2597_p6 = scmp.ne.s32.totalorder %s3654_s8, %s2596_s13  ;;  %p2601_p0 = scmp.lt.u32.totalorder %s3654_s8, %s3777_s30 }
 0x25e   : > { %p2602_p5 = scmp.lt.u32.totalorder %s2600_s4, %s2596_s13  ;;  %p2604_p2 = scmp.lt.u32.totalorder %s2596_s13, %s3654_s8 }
 0x25f   : > { %p2598_p9 = pnand %p2597_p6, %p2900_p12 }
 0x260   : > { %p2603_p8 = por %p2602_p5, %p2601_p0 }
 0x261   : > { %p2599_p10 = pneg %p2598_p9 }
 0x262   : > { %p2605_p13 = por %p2604_p2, %p2603_p8 }
 0x264   : > { %p2606_p3 = pnand %p2605_p13, %p2599_p10 }
 0x266   : > { %2609 = shalt.err (!%p2606_p3)
}
 0x267   : > { %2380 = dma.vmem_to_hbm [thread:$0]  (%p2900_p12), %s3656_s1, 32, %s3654_s8, %s1601_s10  }
 0x268 PF: > { %s3778_s21 = sld [smem:[#allocation15_spill]]  ;;  %s3779_s7 = sld [smem:[#allocation18_spill]] }
 0x269   : > { %p2401_p4 = scmp.ge.s32.totalorder %s2712_s29, 2 }
 0x26e   : > { %s1645_s18 = sand.u32 1, %s3778_s21   ;;  %p3780_p7 = scmp.ne.s32.totalorder %s3779_s7, 0 }
 0x26f   : > { %s1646_s17 = scalar_lea.sflag [#allocation5], %s1645_s18 }
 0x270   : > { %p2392_p11 = pnand %p2401_p4, %p3780_p7 }
 0x272   : > { %2663 = dma.done.wait (!%p2392_p11), %s1646_s17, 2048  }
 0x273   : > { %2665 = vsyncadd (!%p2392_p11), %s1646_s17, 4294965248  ;;  %s3781_s15 = sld [smem:[#allocation16_spill]]  ;;  %s3782_s16 = sld [smem:[#allocation19_spill]] }
 0x279   : > { %s1654_s6 = sand.u32 1, %s3781_s15   ;;  %p3783_p1 = scmp.ne.s32.totalorder %s3782_s16, 0 }
 0x27a   : > { %s1655_s12 = scalar_lea.sflag [#allocation10], %s1654_s6 }
 0x27b   : > { %p2395_p6 = pnand %p2401_p4, %p3783_p1 }
 0x27d   : > { %2667 = dma.done.wait (!%p2395_p6), %s1655_s12, 32  }
 0x27e   : > { %2669 = vsyncadd (!%p2395_p6), %s1655_s12, 4294967264  ;;  %s27_s29 = sadd.s32 1, %s2712_s29   ;;  %s3784_s25 = sld [smem:[#allocation17_spill]] }
 0x27f   : > { %p24_p12 = scmp.ge.s32.totalorder %s27_s29, 6   ;;  %s3785_s1 = sld [smem:[#allocation20_spill]] }
 0x280   : > { %s3786_s8 = sld [smem:[#allocation22_spill]]  ;;  %s3787_s21 = smov %s2676_s22 }
 0x281   : > { %s3788_s22 = smov %s2680_s3  ;;  %s3789_s3 = smov %s2917_s27 }
 0x282   : > { %s3790_s4 = smov %s2688_s23  ;;  %s3791_s23 = smov %s2692_s24 }
 0x283   : > { %s3792_s24 = smov %s2912_s20  ;;  %s3793_s26 = smov %s2708_s28 }
 0x284   :  { %26 = sbr.rel (!%p24_p12) target bundleno = 15 (0xf), region = 112 }
 0x285   : > { %s3794_s27 = smov %s3785_s1 }
 0x286   : > { %s3795_s28 = smov %s3786_s8 }
 0x28b   :  { %1660 = vsyncpa [#allocation4], 1 }
 0x28c   :  { %1662 = vsyncpa [#allocation4 + $0x1], 1 }
 0x28d   :  { %1663 = vsyncpa [#allocation7], 1 }
 0x28e   :  { %1664 = vsyncpa [#allocation5], 1 }
 0x28f   :  { %1666 = vsyncpa [#allocation5 + $0x1], 1 }
 0x290   :  { %1667 = vsyncpa [#allocation10], 1 }
 0x291   :  { %1669 = vsyncpa [#allocation10 + $0x1], 1 }

</bundles_post_ra>
